<compile_context>
chip_gen: v7x
topology: tpu7x:2x2x1
jax: 0.10.0
libtpu: 0.0.40
codegen_flags: <defaults>
</compile_context>

<pallas_src>
import functools

import jax
import jax.numpy as jnp
from jax import lax
from jax.experimental import pallas as pl
from jax.experimental.pallas import tpu as pltpu


# ----------------------------------------------------------------------------
# Fused kernel: embedding -> BiLSTM -> BiGRU -> pooling -> head.  grid = ().
# ----------------------------------------------------------------------------
def _fused_kernel(ids_ref,                        # (T*N, 2) int32: [fwd ids | time-reversed ids]
                  pf_ref, pb_ref, lb_ref,         # LSTM in-proj (emb folded) (V,8H)x2, bias (1,8H)
                  lwh_ref,                        # LSTM block-diag recurrent weights (2H,8H)
                  gwf_ref, gwb_ref, gbi_ref,      # GRU in-proj (2H,6H)x2, folded bias (1,6H)
                  gwh_ref, gbn_ref,               # GRU block-diag recurrent (2H,6H), n-gate hidden bias (1,6H)
                  sele_ref, selo_ref,             # (N,2N) 0/1 selectors for hh_gru.view(-1,2H)
                  w1_ref, b1_ref, w2_ref, b2_ref,  # head
                  out_ref,                        # (N, 6)
                  gi_s,                           # (T*N, 8H) LSTM input projections
                  hn_s, hr_s,                     # (T*N, 2H) h_lstm in normal / time-reversed order
                  ggi_s,                          # (T*N, 6H) GRU input projections
                  fin_s,                          # (2N, H)   stacked GRU final hiddens
                  conc_s,                         # (N, 6H)   pooled/concat head operand
                  *, T, N, H, V):
    f32 = jnp.float32
    bf16 = jnp.bfloat16
    TN = T * N
    H2, H4, H6, H8 = 2 * H, 4 * H, 6 * H, 8 * H
    unroll = True if T <= 8 else 2   # full unroll is correct at small T; cap live ranges otherwise

    # ---- 1. Embedding gather (one-hot matmul) fused with the hoisted BiLSTM
    #         input projection.  Row-block s of gi_s holds the fwd gates of time
    #         s AND the bwd gates of time T-1-s, in gate-interleaved layout
    #         [i_f i_b | f_f f_b | g_f g_b | o_f o_b], so the recurrence does
    #         one contiguous load per step.
    ids = ids_ref[...]
    viota = lax.broadcasted_iota(jnp.int32, (TN, V), 1)
    oh_f = jnp.where(ids[:, 0:1] == viota, 1.0, 0.0).astype(bf16)    # (TN, V)
    oh_b = jnp.where(ids[:, 1:2] == viota, 1.0, 0.0).astype(bf16)    # time-reversed stream
    gi_s[...] = (jnp.dot(oh_f, pf_ref[...], preferred_element_type=f32)
                 + jnp.dot(oh_b, pb_ref[...], preferred_element_type=f32)
                 + lb_ref[...])

    # ---- 2. Fused bidirectional LSTM: one block-diagonal bf16 matmul per step,
    #         2H-wide gate math, state carried in registers.
    lwh = lwh_ref[...]
    zeros2 = jnp.zeros((N, H2), f32)

    def lstm_body(s, carry):
        h, c = carry
        rs = pl.multiple_of(s * N, N)
        rr = pl.multiple_of((T - 1 - s) * N, N)
        g = gi_s[pl.ds(rs, N), :] + jnp.dot(h.astype(bf16), lwh,
                                            preferred_element_type=f32)
        i = jax.nn.sigmoid(g[:, 0:H2])
        f = jax.nn.sigmoid(g[:, H2:H4])
        gg = jnp.tanh(g[:, H4:H6])
        o = jax.nn.sigmoid(g[:, H6:H8])
        c = f * c + i * gg
        h = o * jnp.tanh(c)
        # fwd lane-half is time s, bwd lane-half is time T-1-s; scatter into the
        # normal-order and time-reversed-order h_lstm slabs (off the carry path).
        hn_s[pl.ds(rs, N), pl.ds(0, H)] = h[:, 0:H]
        hn_s[pl.ds(rr, N), pl.ds(H, H)] = h[:, H:H2]
        hr_s[pl.ds(rr, N), pl.ds(0, H)] = h[:, 0:H]
        hr_s[pl.ds(rs, N), pl.ds(H, H)] = h[:, H:H2]
        return h, c

    _ = lax.fori_loop(0, T, lstm_body, (zeros2, zeros2), unroll=unroll)

    # ---- 3. Hoisted BiGRU input projections (one full-slab matmul per direction).
    #         Gate layout [r_f r_b | z_f z_b | n_f n_b]; the r/z hidden biases are
    #         already folded into gbi by the host-side packer.
    hn = hn_s[...].astype(bf16)
    hr = hr_s[...].astype(bf16)
    ggi_s[...] = (jnp.dot(hn, gwf_ref[...], preferred_element_type=f32)
                  + jnp.dot(hr, gwb_ref[...], preferred_element_type=f32)
                  + gbi_ref[...])

    # ---- 4. Fused bidirectional GRU + on-the-fly mean/max pooling (no per-step stores).
    gwh = gwh_ref[...]
    gbn = jnp.broadcast_to(gbn_ref[...], (N, H6))   # hoisted broadcast (not re-emitted per step)

    def gru_body(s, carry):
        hg, acc_sum, acc_max = carry
        rs = pl.multiple_of(s * N, N)
        gi = ggi_s[pl.ds(rs, N), :]
        gh = jnp.dot(hg.astype(bf16), gwh, preferred_element_type=f32) + gbn
        r = jax.nn.sigmoid(gi[:, 0:H2] + gh[:, 0:H2])
        z = jax.nn.sigmoid(gi[:, H2:H4] + gh[:, H2:H4])
        n = jnp.tanh(gi[:, H4:H6] + r * gh[:, H4:H6])
        hg = n + z * (hg - n)                 # == (1 - z) * n + z * hg
        return hg, acc_sum + hg, jnp.maximum(acc_max, hg)

    neg_inf = jnp.full((N, H2), -jnp.inf, f32)
    hg_fin, acc_sum, acc_max = lax.fori_loop(
        0, T, gru_body, (zeros2, zeros2, neg_inf), unroll=unroll)
    avg = acc_sum * (1.0 / T)

    # ---- 5. Head: hh_gru.view(-1, 2H) quirk via tiny precomputed selector
    #         matmuls, then ONE fused (N,6H)@(6H,L) matmul, ReLU, (N,L)@(L,6).
    fin_s[pl.ds(0, N), :] = hg_fin[:, 0:H]     # forward-direction final hidden
    fin_s[pl.ds(N, N), :] = hg_fin[:, H:H2]    # backward-direction final hidden
    fin = fin_s[...].astype(bf16)
    conc_s[:, pl.ds(0, H)] = jnp.dot(sele_ref[...], fin, preferred_element_type=f32)
    conc_s[:, pl.ds(H, H)] = jnp.dot(selo_ref[...], fin, preferred_element_type=f32)
    conc_s[:, pl.ds(H2, H2)] = avg
    conc_s[:, pl.ds(H4, H2)] = acc_max
    z1 = (jnp.dot(conc_s[...].astype(bf16), w1_ref[...], preferred_element_type=f32)
          + b1_ref[...])
    z1 = jnp.maximum(z1, 0.0)                  # ReLU; Dropout(0.1)/Dropout2d = identity (eval)
    out_ref[...] = (jnp.dot(z1.astype(bf16), w2_ref[...], preferred_element_type=f32)
                    + b2_ref[...]).astype(out_ref.dtype)


# ----------------------------------------------------------------------------
# Host-side, one-time weight packing (gate-interleaved, block-diagonal, bf16).
# ----------------------------------------------------------------------------
def _gate_interleave(a_fwd, a_bwd, H):
    """[g0 g1 ...] fwd/bwd blocks -> columns [g0_f g0_b g1_f g1_b ...]."""
    ng = a_fwd.shape[-1] // H
    parts = []
    for g in range(ng):
        parts.append(a_fwd[..., g * H:(g + 1) * H])
        parts.append(a_bwd[..., g * H:(g + 1) * H])
    return jnp.concatenate(parts, axis=-1)


def pack_params(p, H, seq_len):
    """Pack raw parameters for the fused kernel (call once per model)."""
    f32, bf16 = jnp.float32, jnp.bfloat16
    with jax.default_matmul_precision("highest"):
        emb = p["emb"]
        V, _ = emb.shape
        wif, whf, bf_, wib, whb, bb_ = p["lstm"]          # LSTM bias = b_ih + b_hh (pre-summed)
        wgif, wghf, bgif, bghf, wgib, wghb, bgib, bghb = p["gru"]
        w1, b1, w2, b2 = p["head"]

        z_v4 = jnp.zeros((V, 4 * H), f32)
        z_h4 = jnp.zeros((H, 4 * H), f32)
        # Embedding folded into the LSTM input projection: x @ Wi == onehot(x) @ (emb @ Wi).
        pf = _gate_interleave(emb @ wif, z_v4, H).astype(bf16)                 # (V, 8H)
        pb = _gate_interleave(z_v4, emb @ wib, H).astype(bf16)                 # (V, 8H)
        lb = _gate_interleave(bf_, bb_, H).astype(f32)                         # (1, 8H)
        lwh = jnp.concatenate([_gate_interleave(whf, z_h4, H),
                               _gate_interleave(z_h4, whb, H)], axis=0).astype(bf16)   # (2H, 8H)

        z_23 = jnp.zeros((2 * H, 3 * H), f32)
        z_h3 = jnp.zeros((H, 3 * H), f32)
        z_1h = jnp.zeros((1, H), f32)
        gwf = _gate_interleave(wgif, z_23, H).astype(bf16)                     # (2H, 6H)
        gwb = _gate_interleave(z_23, wgib, H).astype(bf16)                     # (2H, 6H)
        # Input biases + (r,z) hidden biases hoisted; n-gate hidden bias stays in-loop.
        bghf_rz = jnp.concatenate([bghf[:, :2 * H], z_1h], axis=-1)
        bghb_rz = jnp.concatenate([bghb[:, :2 * H], z_1h], axis=-1)
        gbi = (_gate_interleave(bgif, bgib, H)
               + _gate_interleave(bghf_rz, bghb_rz, H)).astype(f32)            # (1, 6H)
        bghf_n = jnp.concatenate([z_1h, z_1h, bghf[:, 2 * H:]], axis=-1)
        bghb_n = jnp.concatenate([z_1h, z_1h, bghb[:, 2 * H:]], axis=-1)
        gbn = _gate_interleave(bghf_n, bghb_n, H).astype(f32)                  # (1, 6H)
        gwh = jnp.concatenate([_gate_interleave(wghf, z_h3, H),
                               _gate_interleave(z_h3, wghb, H)], axis=0).astype(bf16)  # (2H, 6H)

        # hh_gru.view(-1, 2H) even/odd row selectors over [fwd_final; bwd_final] (2N rows).
        N = seq_len
        k = jnp.arange(N)[:, None]
        j = jnp.arange(2 * N)[None, :]
        sel_e = (j == 2 * k).astype(bf16)                                      # (N, 2N)
        sel_o = (j == 2 * k + 1).astype(bf16)

        return dict(pf=pf, pb=pb, lb=lb, lwh=lwh,
                    gwf=gwf, gwb=gwb, gbi=gbi, gwh=gwh, gbn=gbn,
                    sel_e=sel_e, sel_o=sel_o,
                    w1=w1.astype(bf16), b1=b1.astype(f32),
                    w2=w2.astype(bf16), b2=b2.astype(f32))


# ----------------------------------------------------------------------------
# Wrapper: tiny id prep + single fused pallas_call.
# ----------------------------------------------------------------------------
def simple_bilstm_forward(x, packed, H, V):
    """x: (B, S) int token ids. Returns (S, 6) float32 logits."""
    # torch: permute(1,0,2) then batch_first RNNs => time axis = B, "batch" = S,
    # so the (B, S) id matrix is already time-major (T=B, N=S).
    T, N = x.shape
    ids_f = x.reshape(T * N)
    ids_b = jnp.flip(x, axis=0).reshape(T * N)            # time-reversed stream for bwd dirs
    ids2 = jnp.stack([ids_f, ids_b], axis=1).astype(jnp.int32)   # (T*N, 2)

    n_out = packed["w2"].shape[1]
    f32 = jnp.float32
    vmem = pl.BlockSpec(memory_space=pltpu.MemorySpace.VMEM)

    kernel = functools.partial(_fused_kernel, T=T, N=N, H=H, V=V)
    return pl.pallas_call(
        kernel,
        out_shape=jax.ShapeDtypeStruct((N, n_out), f32),
        in_specs=[vmem] * 16,
        out_specs=vmem,
        scratch_shapes=[
            pltpu.VMEM((T * N, 8 * H), f32),   # LSTM input projections
            pltpu.VMEM((T * N, 2 * H), f32),   # h_lstm, normal time order
            pltpu.VMEM((T * N, 2 * H), f32),   # h_lstm, reversed time order
            pltpu.VMEM((T * N, 6 * H), f32),   # GRU input projections
            pltpu.VMEM((2 * N, H), f32),       # stacked GRU final hiddens
            pltpu.VMEM((N, 6 * H), f32),       # pooled/concat head operand
        ],
        compiler_params=pltpu.CompilerParams(
            vmem_limit_bytes=32 * 1024 * 1024),
    )(ids2,
      packed["pf"], packed["pb"], packed["lb"], packed["lwh"],
      packed["gwf"], packed["gwb"], packed["gbi"], packed["gwh"], packed["gbn"],
      packed["sel_e"], packed["sel_o"],
      packed["w1"], packed["b1"], packed["w2"], packed["b2"])


# ----------------------------------------------------------------------------
# Pure-JAX reference (no Pallas) mirroring the torch forward, for validation.
# ----------------------------------------------------------------------------
def _reference_forward(x, p, H):
    with jax.default_matmul_precision("highest"):
        emb = p["emb"][x]                      # (B, S, E); Dropout2d = identity (eval)
        x_tm = emb                             # already time-major (T=B, N=S, E)
        T, N, _ = x_tm.shape
        wif, whf, bf_, wib, whb, bb_ = p["lstm"]
        wgif, wghf, bgif, bghf, wgib, wghb, bgib, bghb = p["gru"]
        w1, b1, w2, b2 = p["head"]

        def lstm_dir(xs, wi, wh, b):
            h = jnp.zeros((N, H)); c = jnp.zeros((N, H)); outs = []
            for t in range(T):
                g = xs[t] @ wi + h @ wh + b
                i = jax.nn.sigmoid(g[:, :H]); f = jax.nn.sigmoid(g[:, H:2 * H])
                gg = jnp.tanh(g[:, 2 * H:3 * H]); o = jax.nn.sigmoid(g[:, 3 * H:])
                c = f * c + i * gg
                h = o * jnp.tanh(c)
                outs.append(h)
            return jnp.stack(outs, 0)

        def gru_dir(xs, wi, wh, bi, bh):
            h = jnp.zeros((N, H)); outs = []
            for t in range(T):
                gi = xs[t] @ wi + bi
                gh = h @ wh + bh
                r = jax.nn.sigmoid(gi[:, :H] + gh[:, :H])
                z = jax.nn.sigmoid(gi[:, H:2 * H] + gh[:, H:2 * H])
                n = jnp.tanh(gi[:, 2 * H:] + r * gh[:, 2 * H:])
                h = (1.0 - z) * n + z * h
                outs.append(h)
            return jnp.stack(outs, 0)

        hf = lstm_dir(x_tm, wif, whf, bf_)
        hb = lstm_dir(x_tm[::-1], wib, whb, bb_)[::-1]
        h_lstm = jnp.concatenate([hf, hb], axis=-1)          # (T, N, 2H)

        gf = gru_dir(h_lstm, wgif, wghf, bgif, bghf)
        gb = gru_dir(h_lstm[::-1], wgib, wghb, bgib, bghb)[::-1]
        h_gru = jnp.concatenate([gf, gb], axis=-1)           # (T, N, 2H)

        hh_view = jnp.stack([gf[-1], gb[0]], 0).reshape(-1, 2 * H)   # torch .view quirk
        avg_pool = jnp.mean(h_gru, axis=0)
        max_pool = jnp.max(h_gru, axis=0)
        conc = jnp.concatenate([hh_view, avg_pool, max_pool], axis=-1)
        z = jnp.maximum(conc @ w1 + b1, 0.0)
        return z @ w2 + b2


def init_params(key, V, E, H, L):
    ks = jax.random.split(key, 20)
    n = lambda k, shape: (0.1 * jax.random.normal(k, shape)).astype(jnp.float32)
    return {
        "emb": n(ks[0], (V, E)),
        # NOTE: LSTM bias = b_ih + b_hh pre-summed (PyTorch keeps two biases).
        "lstm": (
            n(ks[1], (E, 4 * H)), n(ks[2], (H, 4 * H)), n(ks[3], (1, 4 * H)),   # fwd
            n(ks[4], (E, 4 * H)), n(ks[5], (H, 4 * H)), n(ks[6], (1, 4 * H)),   # bwd
        ),
        "gru": (
            n(ks[7], (2 * H, 3 * H)), n(ks[8], (H, 3 * H)),
            n(ks[9], (1, 3 * H)), n(ks[10], (1, 3 * H)),                        # fwd
            n(ks[11], (2 * H, 3 * H)), n(ks[12], (H, 3 * H)),
            n(ks[13], (1, 3 * H)), n(ks[14], (1, 3 * H)),                       # bwd
        ),
        "head": (
            n(ks[15], (6 * H, L)), n(ks[16], (1, L)),
            n(ks[17], (L, 6)), n(ks[18], (1, 6)),
        ),
    }


if __name__ == "__main__":
    V, E, H, L = 100, 32, 32, 64   # max_features, emb_dim, hidden_size, lin_size
    B, S = 4, 8                    # batch, seq_len (RNN time axis = B after permute)

    key = jax.random.PRNGKey(0)
    kx, kp = jax.random.split(key)
    x = jax.random.randint(kx, (B, S), 0, V, dtype=jnp.int32)
    params = init_params(kp, V, E, H, L)
    packed = pack_params(params, H, seq_len=S)   # one-time host-side weight packing

    out = simple_bilstm_forward(x, packed, H, V)
    out = jax.block_until_ready(out)
    assert out.shape == (S, 6) and out.dtype == jnp.float32

    ref = _reference_forward(x, params, H)
    assert bool(jnp.allclose(out, ref, rtol=1e-2, atol=1e-2)), (
        "Pallas kernel output mismatch vs pure-JAX reference")
    print("KERNEL_OK")
</pallas_src>

<mosaic_0001>
module attributes {stable_mosaic.version = 11 : i64} {
  func.func @_fused_kernel(%arg0: memref<32x2xi32, #tpu.memory_space<vmem>>, %arg1: memref<100x256xbf16, #tpu.memory_space<vmem>>, %arg2: memref<100x256xbf16, #tpu.memory_space<vmem>>, %arg3: memref<1x256xf32, #tpu.memory_space<vmem>>, %arg4: memref<64x256xbf16, #tpu.memory_space<vmem>>, %arg5: memref<64x192xbf16, #tpu.memory_space<vmem>>, %arg6: memref<64x192xbf16, #tpu.memory_space<vmem>>, %arg7: memref<1x192xf32, #tpu.memory_space<vmem>>, %arg8: memref<64x192xbf16, #tpu.memory_space<vmem>>, %arg9: memref<1x192xf32, #tpu.memory_space<vmem>>, %arg10: memref<8x16xbf16, #tpu.memory_space<vmem>>, %arg11: memref<8x16xbf16, #tpu.memory_space<vmem>>, %arg12: memref<192x64xbf16, #tpu.memory_space<vmem>>, %arg13: memref<1x64xf32, #tpu.memory_space<vmem>>, %arg14: memref<64x6xbf16, #tpu.memory_space<vmem>>, %arg15: memref<1x6xf32, #tpu.memory_space<vmem>>, %arg16: memref<8x6xf32, #tpu.memory_space<vmem>>, %arg17: memref<32x256xf32, #tpu.memory_space<vmem>>, %arg18: memref<32x64xf32, #tpu.memory_space<vmem>>, %arg19: memref<32x64xf32, #tpu.memory_space<vmem>>, %arg20: memref<32x192xf32, #tpu.memory_space<vmem>>, %arg21: memref<16x32xf32, #tpu.memory_space<vmem>>, %arg22: memref<8x192xf32, #tpu.memory_space<vmem>>) attributes {dimension_semantics = [], scalar_prefetch = 0 : i64, scratch_operands = 6 : i64, tpu.core_type = #tpu.core_type<tc>} {
    %c0 = arith.constant 0 : index
    %c0_0 = arith.constant 0 : index
    %0 = vector.load %arg0[%c0, %c0_0] : memref<32x2xi32, #tpu.memory_space<vmem>>, vector<32x2xi32>
    %1 = tpu.iota {dimensions = array<i32: 1>} : vector<32x100xi32>
    %2 = vector.extract_strided_slice %0 {offsets = [0, 0], sizes = [32, 1], strides = [1, 1]} : vector<32x2xi32> to vector<32x1xi32>
    %3 = vector.broadcast %2 : vector<32x1xi32> to vector<32x100xi32>
    %4 = arith.cmpi eq, %3, %1 : vector<32x100xi32>
    %cst = arith.constant 1.000000e+00 : f32
    %cst_1 = arith.constant 0.000000e+00 : f32
    %5 = vector.broadcast %cst : f32 to vector<32x100xf32>
    %6 = vector.broadcast %cst_1 : f32 to vector<32x100xf32>
    %7 = arith.select %4, %5, %6 : vector<32x100xi1>, vector<32x100xf32>
    %8 = arith.truncf %7 : vector<32x100xf32> to vector<32x100xbf16>
    %9 = vector.extract_strided_slice %0 {offsets = [0, 1], sizes = [32, 1], strides = [1, 1]} : vector<32x2xi32> to vector<32x1xi32>
    %10 = vector.broadcast %9 : vector<32x1xi32> to vector<32x100xi32>
    %11 = arith.cmpi eq, %10, %1 : vector<32x100xi32>
    %cst_2 = arith.constant 1.000000e+00 : f32
    %cst_3 = arith.constant 0.000000e+00 : f32
    %12 = vector.broadcast %cst_2 : f32 to vector<32x100xf32>
    %13 = vector.broadcast %cst_3 : f32 to vector<32x100xf32>
    %14 = arith.select %11, %12, %13 : vector<32x100xi1>, vector<32x100xf32>
    %15 = arith.truncf %14 : vector<32x100xf32> to vector<32x100xbf16>
    %c0_4 = arith.constant 0 : index
    %c0_5 = arith.constant 0 : index
    %16 = vector.load %arg1[%c0_4, %c0_5] : memref<100x256xbf16, #tpu.memory_space<vmem>>, vector<100x256xbf16>
    %cst_6 = arith.constant dense<0.000000e+00> : vector<32x256xf32>
    %17 = tpu.matmul %8, %16, %cst_6 {dimension_numbers = #tpu.dot_dimension_numbers<[1], [0], [0], [1], [0, 0, 1, 1], [], []>} : vector<32x100xbf16>, vector<100x256xbf16>, vector<32x256xf32> -> vector<32x256xf32>
    %c0_7 = arith.constant 0 : index
    %c0_8 = arith.constant 0 : index
    %18 = vector.load %arg2[%c0_7, %c0_8] : memref<100x256xbf16, #tpu.memory_space<vmem>>, vector<100x256xbf16>
    %cst_9 = arith.constant dense<0.000000e+00> : vector<32x256xf32>
    %19 = tpu.matmul %15, %18, %cst_9 {dimension_numbers = #tpu.dot_dimension_numbers<[1], [0], [0], [1], [0, 0, 1, 1], [], []>} : vector<32x100xbf16>, vector<100x256xbf16>, vector<32x256xf32> -> vector<32x256xf32>
    %20 = arith.addf %17, %19 : vector<32x256xf32>
    %c0_10 = arith.constant 0 : index
    %c0_11 = arith.constant 0 : index
    %21 = vector.load %arg3[%c0_10, %c0_11] : memref<1x256xf32, #tpu.memory_space<vmem>>, vector<1x256xf32>
    %22 = vector.broadcast %21 : vector<1x256xf32> to vector<32x256xf32>
    %23 = arith.addf %20, %22 : vector<32x256xf32>
    %c0_12 = arith.constant 0 : index
    %c0_13 = arith.constant 0 : index
    %24 = vector.load %arg17[%c0_12, %c0_13] : memref<32x256xf32, #tpu.memory_space<vmem>>, vector<32x256xf32>
    tpu.vector_store %arg17[%c0_12, %c0_13], %23 {strides = array<i32>} : memref<32x256xf32, #tpu.memory_space<vmem>>, vector<32x256xf32>,
    %c0_14 = arith.constant 0 : index
    %c0_15 = arith.constant 0 : index
    %25 = vector.load %arg4[%c0_14, %c0_15] : memref<64x256xbf16, #tpu.memory_space<vmem>>, vector<64x256xbf16>
    %cst_16 = arith.constant 0.000000e+00 : f32
    %26 = vector.broadcast %cst_16 : f32 to vector<8x64xf32>
    %c0_i32 = arith.constant 0 : i32
    %c8_i32 = arith.constant 8 : i32
    %27 = arith.muli %c0_i32, %c8_i32 : i32
    %28 = tpu.assume_multiple %27, 8 : i32
    %c3_i32 = arith.constant 3 : i32
    %29 = arith.subi %c3_i32, %c0_i32 : i32
    %c8_i32_17 = arith.constant 8 : i32
    %30 = arith.muli %29, %c8_i32_17 : i32
    %31 = tpu.assume_multiple %30, 8 : i32
    %32 = arith.index_cast %28 : i32 to index
    %c0_18 = arith.constant 0 : index
    %33 = vector.load %arg17[%32, %c0_18] : memref<32x256xf32, #tpu.memory_space<vmem>>, vector<8x256xf32>
    %34 = arith.truncf %26 : vector<8x64xf32> to vector<8x64xbf16>
    %cst_19 = arith.constant dense<0.000000e+00> : vector<8x256xf32>
    %35 = tpu.matmul %34, %25, %cst_19 {dimension_numbers = #tpu.dot_dimension_numbers<[1], [0], [0], [1], [0, 0, 1, 1], [], []>} : vector<8x64xbf16>, vector<64x256xbf16>, vector<8x256xf32> -> vector<8x256xf32>
    %36 = arith.addf %33, %35 : vector<8x256xf32>
    %37 = vector.extract_strided_slice %36 {offsets = [0, 0], sizes = [8, 64], strides = [1, 1]} : vector<8x256xf32> to vector<8x64xf32>
    %38 = arith.negf %37 : vector<8x64xf32>
    %39 = math.exp %38 : vector<8x64xf32>
    %cst_20 = arith.constant 1.000000e+00 : f32
    %40 = vector.broadcast %cst_20 : f32 to vector<8x64xf32>
    %41 = arith.addf %40, %39 : vector<8x64xf32>
    %42 = arith.divf %40, %41 : vector<8x64xf32>
    %43 = vector.extract_strided_slice %36 {offsets = [0, 64], sizes = [8, 64], strides = [1, 1]} : vector<8x256xf32> to vector<8x64xf32>
    %44 = arith.negf %43 : vector<8x64xf32>
    %45 = math.exp %44 : vector<8x64xf32>
    %cst_21 = arith.constant 1.000000e+00 : f32
    %46 = vector.broadcast %cst_21 : f32 to vector<8x64xf32>
    %47 = arith.addf %46, %45 : vector<8x64xf32>
    %48 = arith.divf %46, %47 : vector<8x64xf32>
    %49 = vector.extract_strided_slice %36 {offsets = [0, 128], sizes = [8, 64], strides = [1, 1]} : vector<8x256xf32> to vector<8x64xf32>
    %50 = math.tanh %49 : vector<8x64xf32>
    %51 = vector.extract_strided_slice %36 {offsets = [0, 192], sizes = [8, 64], strides = [1, 1]} : vector<8x256xf32> to vector<8x64xf32>
    %52 = arith.negf %51 : vector<8x64xf32>
    %53 = math.exp %52 : vector<8x64xf32>
    %cst_22 = arith.constant 1.000000e+00 : f32
    %54 = vector.broadcast %cst_22 : f32 to vector<8x64xf32>
    %55 = arith.addf %54, %53 : vector<8x64xf32>
    %56 = arith.divf %54, %55 : vector<8x64xf32>
    %57 = arith.mulf %48, %26 : vector<8x64xf32>
    %58 = arith.mulf %42, %50 : vector<8x64xf32>
    %59 = arith.addf %57, %58 : vector<8x64xf32>
    %60 = math.tanh %59 : vector<8x64xf32>
    %61 = arith.mulf %56, %60 : vector<8x64xf32>
    %62 = vector.extract_strided_slice %61 {offsets = [0, 0], sizes = [8, 32], strides = [1, 1]} : vector<8x64xf32> to vector<8x32xf32>
    %63 = arith.index_cast %28 : i32 to index
    %c0_23 = arith.constant 0 : index
    %64 = vector.load %arg18[%63, %c0_23] : memref<32x64xf32, #tpu.memory_space<vmem>>, vector<8x32xf32>
    tpu.vector_store %arg18[%63, %c0_23], %62 {strides = array<i32>} : memref<32x64xf32, #tpu.memory_space<vmem>>, vector<8x32xf32>,
    %65 = vector.extract_strided_slice %61 {offsets = [0, 32], sizes = [8, 32], strides = [1, 1]} : vector<8x64xf32> to vector<8x32xf32>
    %66 = arith.index_cast %31 : i32 to index
    %c32 = arith.constant 32 : index
    %67 = vector.load %arg18[%66, %c32] : memref<32x64xf32, #tpu.memory_space<vmem>>, vector<8x32xf32>
    tpu.vector_store %arg18[%66, %c32], %65 {strides = array<i32>} : memref<32x64xf32, #tpu.memory_space<vmem>>, vector<8x32xf32>,
    %68 = vector.extract_strided_slice %61 {offsets = [0, 0], sizes = [8, 32], strides = [1, 1]} : vector<8x64xf32> to vector<8x32xf32>
    %69 = arith.index_cast %31 : i32 to index
    %c0_24 = arith.constant 0 : index
    %70 = vector.load %arg19[%69, %c0_24] : memref<32x64xf32, #tpu.memory_space<vmem>>, vector<8x32xf32>
    tpu.vector_store %arg19[%69, %c0_24], %68 {strides = array<i32>} : memref<32x64xf32, #tpu.memory_space<vmem>>, vector<8x32xf32>,
    %71 = vector.extract_strided_slice %61 {offsets = [0, 32], sizes = [8, 32], strides = [1, 1]} : vector<8x64xf32> to vector<8x32xf32>
    %72 = arith.index_cast %28 : i32 to index
    %c32_25 = arith.constant 32 : index
    %73 = vector.load %arg19[%72, %c32_25] : memref<32x64xf32, #tpu.memory_space<vmem>>, vector<8x32xf32>
    tpu.vector_store %arg19[%72, %c32_25], %71 {strides = array<i32>} : memref<32x64xf32, #tpu.memory_space<vmem>>, vector<8x32xf32>,
    %c1_i32 = arith.constant 1 : i32
    %c8_i32_26 = arith.constant 8 : i32
    %74 = arith.muli %c1_i32, %c8_i32_26 : i32
    %75 = tpu.assume_multiple %74, 8 : i32
    %c3_i32_27 = arith.constant 3 : i32
    %76 = arith.subi %c3_i32_27, %c1_i32 : i32
    %c8_i32_28 = arith.constant 8 : i32
    %77 = arith.muli %76, %c8_i32_28 : i32
    %78 = tpu.assume_multiple %77, 8 : i32
    %79 = arith.index_cast %75 : i32 to index
    %c0_29 = arith.constant 0 : index
    %80 = vector.load %arg17[%79, %c0_29] : memref<32x256xf32, #tpu.memory_space<vmem>>, vector<8x256xf32>
    %81 = arith.truncf %61 : vector<8x64xf32> to vector<8x64xbf16>
    %cst_30 = arith.constant dense<0.000000e+00> : vector<8x256xf32>
    %82 = tpu.matmul %81, %25, %cst_30 {dimension_numbers = #tpu.dot_dimension_numbers<[1], [0], [0], [1], [0, 0, 1, 1], [], []>} : vector<8x64xbf16>, vector<64x256xbf16>, vector<8x256xf32> -> vector<8x256xf32>
    %83 = arith.addf %80, %82 : vector<8x256xf32>
    %84 = vector.extract_strided_slice %83 {offsets = [0, 0], sizes = [8, 64], strides = [1, 1]} : vector<8x256xf32> to vector<8x64xf32>
    %85 = arith.negf %84 : vector<8x64xf32>
    %86 = math.exp %85 : vector<8x64xf32>
    %cst_31 = arith.constant 1.000000e+00 : f32
    %87 = vector.broadcast %cst_31 : f32 to vector<8x64xf32>
    %88 = arith.addf %87, %86 : vector<8x64xf32>
    %89 = arith.divf %87, %88 : vector<8x64xf32>
    %90 = vector.extract_strided_slice %83 {offsets = [0, 64], sizes = [8, 64], strides = [1, 1]} : vector<8x256xf32> to vector<8x64xf32>
    %91 = arith.negf %90 : vector<8x64xf32>
    %92 = math.exp %91 : vector<8x64xf32>
    %cst_32 = arith.constant 1.000000e+00 : f32
    %93 = vector.broadcast %cst_32 : f32 to vector<8x64xf32>
    %94 = arith.addf %93, %92 : vector<8x64xf32>
    %95 = arith.divf %93, %94 : vector<8x64xf32>
    %96 = vector.extract_strided_slice %83 {offsets = [0, 128], sizes = [8, 64], strides = [1, 1]} : vector<8x256xf32> to vector<8x64xf32>
    %97 = math.tanh %96 : vector<8x64xf32>
    %98 = vector.extract_strided_slice %83 {offsets = [0, 192], sizes = [8, 64], strides = [1, 1]} : vector<8x256xf32> to vector<8x64xf32>
    %99 = arith.negf %98 : vector<8x64xf32>
    %100 = math.exp %99 : vector<8x64xf32>
    %cst_33 = arith.constant 1.000000e+00 : f32
    %101 = vector.broadcast %cst_33 : f32 to vector<8x64xf32>
    %102 = arith.addf %101, %100 : vector<8x64xf32>
    %103 = arith.divf %101, %102 : vector<8x64xf32>
    %104 = arith.mulf %95, %59 : vector<8x64xf32>
    %105 = arith.mulf %89, %97 : vector<8x64xf32>
    %106 = arith.addf %104, %105 : vector<8x64xf32>
    %107 = math.tanh %106 : vector<8x64xf32>
    %108 = arith.mulf %103, %107 : vector<8x64xf32>
    %109 = vector.extract_strided_slice %108 {offsets = [0, 0], sizes = [8, 32], strides = [1, 1]} : vector<8x64xf32> to vector<8x32xf32>
    %110 = arith.index_cast %75 : i32 to index
    %c0_34 = arith.constant 0 : index
    %111 = vector.load %arg18[%110, %c0_34] : memref<32x64xf32, #tpu.memory_space<vmem>>, vector<8x32xf32>
    tpu.vector_store %arg18[%110, %c0_34], %109 {strides = array<i32>} : memref<32x64xf32, #tpu.memory_space<vmem>>, vector<8x32xf32>,
    %112 = vector.extract_strided_slice %108 {offsets = [0, 32], sizes = [8, 32], strides = [1, 1]} : vector<8x64xf32> to vector<8x32xf32>
    %113 = arith.index_cast %78 : i32 to index
    %c32_35 = arith.constant 32 : index
    %114 = vector.load %arg18[%113, %c32_35] : memref<32x64xf32, #tpu.memory_space<vmem>>, vector<8x32xf32>
    tpu.vector_store %arg18[%113, %c32_35], %112 {strides = array<i32>} : memref<32x64xf32, #tpu.memory_space<vmem>>, vector<8x32xf32>,
    %115 = vector.extract_strided_slice %108 {offsets = [0, 0], sizes = [8, 32], strides = [1, 1]} : vector<8x64xf32> to vector<8x32xf32>
    %116 = arith.index_cast %78 : i32 to index
    %c0_36 = arith.constant 0 : index
    %117 = vector.load %arg19[%116, %c0_36] : memref<32x64xf32, #tpu.memory_space<vmem>>, vector<8x32xf32>
    tpu.vector_store %arg19[%116, %c0_36], %115 {strides = array<i32>} : memref<32x64xf32, #tpu.memory_space<vmem>>, vector<8x32xf32>,
    %118 = vector.extract_strided_slice %108 {offsets = [0, 32], sizes = [8, 32], strides = [1, 1]} : vector<8x64xf32> to vector<8x32xf32>
    %119 = arith.index_cast %75 : i32 to index
    %c32_37 = arith.constant 32 : index
    %120 = vector.load %arg19[%119, %c32_37] : memref<32x64xf32, #tpu.memory_space<vmem>>, vector<8x32xf32>
    tpu.vector_store %arg19[%119, %c32_37], %118 {strides = array<i32>} : memref<32x64xf32, #tpu.memory_space<vmem>>, vector<8x32xf32>,
    %c2_i32 = arith.constant 2 : i32
    %c8_i32_38 = arith.constant 8 : i32
    %121 = arith.muli %c2_i32, %c8_i32_38 : i32
    %122 = tpu.assume_multiple %121, 8 : i32
    %c3_i32_39 = arith.constant 3 : i32
    %123 = arith.subi %c3_i32_39, %c2_i32 : i32
    %c8_i32_40 = arith.constant 8 : i32
    %124 = arith.muli %123, %c8_i32_40 : i32
    %125 = tpu.assume_multiple %124, 8 : i32
    %126 = arith.index_cast %122 : i32 to index
    %c0_41 = arith.constant 0 : index
    %127 = vector.load %arg17[%126, %c0_41] : memref<32x256xf32, #tpu.memory_space<vmem>>, vector<8x256xf32>
    %128 = arith.truncf %108 : vector<8x64xf32> to vector<8x64xbf16>
    %cst_42 = arith.constant dense<0.000000e+00> : vector<8x256xf32>
    %129 = tpu.matmul %128, %25, %cst_42 {dimension_numbers = #tpu.dot_dimension_numbers<[1], [0], [0], [1], [0, 0, 1, 1], [], []>} : vector<8x64xbf16>, vector<64x256xbf16>, vector<8x256xf32> -> vector<8x256xf32>
    %130 = arith.addf %127, %129 : vector<8x256xf32>
    %131 = vector.extract_strided_slice %130 {offsets = [0, 0], sizes = [8, 64], strides = [1, 1]} : vector<8x256xf32> to vector<8x64xf32>
    %132 = arith.negf %131 : vector<8x64xf32>
    %133 = math.exp %132 : vector<8x64xf32>
    %cst_43 = arith.constant 1.000000e+00 : f32
    %134 = vector.broadcast %cst_43 : f32 to vector<8x64xf32>
    %135 = arith.addf %134, %133 : vector<8x64xf32>
    %136 = arith.divf %134, %135 : vector<8x64xf32>
    %137 = vector.extract_strided_slice %130 {offsets = [0, 64], sizes = [8, 64], strides = [1, 1]} : vector<8x256xf32> to vector<8x64xf32>
    %138 = arith.negf %137 : vector<8x64xf32>
    %139 = math.exp %138 : vector<8x64xf32>
    %cst_44 = arith.constant 1.000000e+00 : f32
    %140 = vector.broadcast %cst_44 : f32 to vector<8x64xf32>
    %141 = arith.addf %140, %139 : vector<8x64xf32>
    %142 = arith.divf %140, %141 : vector<8x64xf32>
    %143 = vector.extract_strided_slice %130 {offsets = [0, 128], sizes = [8, 64], strides = [1, 1]} : vector<8x256xf32> to vector<8x64xf32>
    %144 = math.tanh %143 : vector<8x64xf32>
    %145 = vector.extract_strided_slice %130 {offsets = [0, 192], sizes = [8, 64], strides = [1, 1]} : vector<8x256xf32> to vector<8x64xf32>
    %146 = arith.negf %145 : vector<8x64xf32>
    %147 = math.exp %146 : vector<8x64xf32>
    %cst_45 = arith.constant 1.000000e+00 : f32
    %148 = vector.broadcast %cst_45 : f32 to vector<8x64xf32>
    %149 = arith.addf %148, %147 : vector<8x64xf32>
    %150 = arith.divf %148, %149 : vector<8x64xf32>
    %151 = arith.mulf %142, %106 : vector<8x64xf32>
    %152 = arith.mulf %136, %144 : vector<8x64xf32>
    %153 = arith.addf %151, %152 : vector<8x64xf32>
    %154 = math.tanh %153 : vector<8x64xf32>
    %155 = arith.mulf %150, %154 : vector<8x64xf32>
    %156 = vector.extract_strided_slice %155 {offsets = [0, 0], sizes = [8, 32], strides = [1, 1]} : vector<8x64xf32> to vector<8x32xf32>
    %157 = arith.index_cast %122 : i32 to index
    %c0_46 = arith.constant 0 : index
    %158 = vector.load %arg18[%157, %c0_46] : memref<32x64xf32, #tpu.memory_space<vmem>>, vector<8x32xf32>
    tpu.vector_store %arg18[%157, %c0_46], %156 {strides = array<i32>} : memref<32x64xf32, #tpu.memory_space<vmem>>, vector<8x32xf32>,
    %159 = vector.extract_strided_slice %155 {offsets = [0, 32], sizes = [8, 32], strides = [1, 1]} : vector<8x64xf32> to vector<8x32xf32>
    %160 = arith.index_cast %125 : i32 to index
    %c32_47 = arith.constant 32 : index
    %161 = vector.load %arg18[%160, %c32_47] : memref<32x64xf32, #tpu.memory_space<vmem>>, vector<8x32xf32>
    tpu.vector_store %arg18[%160, %c32_47], %159 {strides = array<i32>} : memref<32x64xf32, #tpu.memory_space<vmem>>, vector<8x32xf32>,
    %162 = vector.extract_strided_slice %155 {offsets = [0, 0], sizes = [8, 32], strides = [1, 1]} : vector<8x64xf32> to vector<8x32xf32>
    %163 = arith.index_cast %125 : i32 to index
    %c0_48 = arith.constant 0 : index
    %164 = vector.load %arg19[%163, %c0_48] : memref<32x64xf32, #tpu.memory_space<vmem>>, vector<8x32xf32>
    tpu.vector_store %arg19[%163, %c0_48], %162 {strides = array<i32>} : memref<32x64xf32, #tpu.memory_space<vmem>>, vector<8x32xf32>,
    %165 = vector.extract_strided_slice %155 {offsets = [0, 32], sizes = [8, 32], strides = [1, 1]} : vector<8x64xf32> to vector<8x32xf32>
    %166 = arith.index_cast %122 : i32 to index
    %c32_49 = arith.constant 32 : index
    %167 = vector.load %arg19[%166, %c32_49] : memref<32x64xf32, #tpu.memory_space<vmem>>, vector<8x32xf32>
    tpu.vector_store %arg19[%166, %c32_49], %165 {strides = array<i32>} : memref<32x64xf32, #tpu.memory_space<vmem>>, vector<8x32xf32>,
    %c3_i32_50 = arith.constant 3 : i32
    %c8_i32_51 = arith.constant 8 : i32
    %168 = arith.muli %c3_i32_50, %c8_i32_51 : i32
    %169 = tpu.assume_multiple %168, 8 : i32
    %c3_i32_52 = arith.constant 3 : i32
    %170 = arith.subi %c3_i32_52, %c3_i32_50 : i32
    %c8_i32_53 = arith.constant 8 : i32
    %171 = arith.muli %170, %c8_i32_53 : i32
    %172 = tpu.assume_multiple %171, 8 : i32
    %173 = arith.index_cast %169 : i32 to index
    %c0_54 = arith.constant 0 : index
    %174 = vector.load %arg17[%173, %c0_54] : memref<32x256xf32, #tpu.memory_space<vmem>>, vector<8x256xf32>
    %175 = arith.truncf %155 : vector<8x64xf32> to vector<8x64xbf16>
    %cst_55 = arith.constant dense<0.000000e+00> : vector<8x256xf32>
    %176 = tpu.matmul %175, %25, %cst_55 {dimension_numbers = #tpu.dot_dimension_numbers<[1], [0], [0], [1], [0, 0, 1, 1], [], []>} : vector<8x64xbf16>, vector<64x256xbf16>, vector<8x256xf32> -> vector<8x256xf32>
    %177 = arith.addf %174, %176 : vector<8x256xf32>
    %178 = vector.extract_strided_slice %177 {offsets = [0, 0], sizes = [8, 64], strides = [1, 1]} : vector<8x256xf32> to vector<8x64xf32>
    %179 = arith.negf %178 : vector<8x64xf32>
    %180 = math.exp %179 : vector<8x64xf32>
    %cst_56 = arith.constant 1.000000e+00 : f32
    %181 = vector.broadcast %cst_56 : f32 to vector<8x64xf32>
    %182 = arith.addf %181, %180 : vector<8x64xf32>
    %183 = arith.divf %181, %182 : vector<8x64xf32>
    %184 = vector.extract_strided_slice %177 {offsets = [0, 64], sizes = [8, 64], strides = [1, 1]} : vector<8x256xf32> to vector<8x64xf32>
    %185 = arith.negf %184 : vector<8x64xf32>
    %186 = math.exp %185 : vector<8x64xf32>
    %cst_57 = arith.constant 1.000000e+00 : f32
    %187 = vector.broadcast %cst_57 : f32 to vector<8x64xf32>
    %188 = arith.addf %187, %186 : vector<8x64xf32>
    %189 = arith.divf %187, %188 : vector<8x64xf32>
    %190 = vector.extract_strided_slice %177 {offsets = [0, 128], sizes = [8, 64], strides = [1, 1]} : vector<8x256xf32> to vector<8x64xf32>
    %191 = math.tanh %190 : vector<8x64xf32>
    %192 = vector.extract_strided_slice %177 {offsets = [0, 192], sizes = [8, 64], strides = [1, 1]} : vector<8x256xf32> to vector<8x64xf32>
    %193 = arith.negf %192 : vector<8x64xf32>
    %194 = math.exp %193 : vector<8x64xf32>
    %cst_58 = arith.constant 1.000000e+00 : f32
    %195 = vector.broadcast %cst_58 : f32 to vector<8x64xf32>
    %196 = arith.addf %195, %194 : vector<8x64xf32>
    %197 = arith.divf %195, %196 : vector<8x64xf32>
    %198 = arith.mulf %189, %153 : vector<8x64xf32>
    %199 = arith.mulf %183, %191 : vector<8x64xf32>
    %200 = arith.addf %198, %199 : vector<8x64xf32>
    %201 = math.tanh %200 : vector<8x64xf32>
    %202 = arith.mulf %197, %201 : vector<8x64xf32>
    %203 = vector.extract_strided_slice %202 {offsets = [0, 0], sizes = [8, 32], strides = [1, 1]} : vector<8x64xf32> to vector<8x32xf32>
    %204 = arith.index_cast %169 : i32 to index
    %c0_59 = arith.constant 0 : index
    %205 = vector.load %arg18[%204, %c0_59] : memref<32x64xf32, #tpu.memory_space<vmem>>, vector<8x32xf32>
    tpu.vector_store %arg18[%204, %c0_59], %203 {strides = array<i32>} : memref<32x64xf32, #tpu.memory_space<vmem>>, vector<8x32xf32>,
    %206 = vector.extract_strided_slice %202 {offsets = [0, 32], sizes = [8, 32], strides = [1, 1]} : vector<8x64xf32> to vector<8x32xf32>
    %207 = arith.index_cast %172 : i32 to index
    %c32_60 = arith.constant 32 : index
    %208 = vector.load %arg18[%207, %c32_60] : memref<32x64xf32, #tpu.memory_space<vmem>>, vector<8x32xf32>
    tpu.vector_store %arg18[%207, %c32_60], %206 {strides = array<i32>} : memref<32x64xf32, #tpu.memory_space<vmem>>, vector<8x32xf32>,
    %209 = vector.extract_strided_slice %202 {offsets = [0, 0], sizes = [8, 32], strides = [1, 1]} : vector<8x64xf32> to vector<8x32xf32>
    %210 = arith.index_cast %172 : i32 to index
    %c0_61 = arith.constant 0 : index
    %211 = vector.load %arg19[%210, %c0_61] : memref<32x64xf32, #tpu.memory_space<vmem>>, vector<8x32xf32>
    tpu.vector_store %arg19[%210, %c0_61], %209 {strides = array<i32>} : memref<32x64xf32, #tpu.memory_space<vmem>>, vector<8x32xf32>,
    %212 = vector.extract_strided_slice %202 {offsets = [0, 32], sizes = [8, 32], strides = [1, 1]} : vector<8x64xf32> to vector<8x32xf32>
    %213 = arith.index_cast %169 : i32 to index
    %c32_62 = arith.constant 32 : index
    %214 = vector.load %arg19[%213, %c32_62] : memref<32x64xf32, #tpu.memory_space<vmem>>, vector<8x32xf32>
    tpu.vector_store %arg19[%213, %c32_62], %212 {strides = array<i32>} : memref<32x64xf32, #tpu.memory_space<vmem>>, vector<8x32xf32>,
    %c4_i32 = arith.constant 4 : i32
    %c0_63 = arith.constant 0 : index
    %c0_64 = arith.constant 0 : index
    %215 = vector.load %arg18[%c0_63, %c0_64] : memref<32x64xf32, #tpu.memory_space<vmem>>, vector<32x64xf32>
    %216 = arith.truncf %215 : vector<32x64xf32> to vector<32x64xbf16>
    %c0_65 = arith.constant 0 : index
    %c0_66 = arith.constant 0 : index
    %217 = vector.load %arg19[%c0_65, %c0_66] : memref<32x64xf32, #tpu.memory_space<vmem>>, vector<32x64xf32>
    %218 = arith.truncf %217 : vector<32x64xf32> to vector<32x64xbf16>
    %c0_67 = arith.constant 0 : index
    %c0_68 = arith.constant 0 : index
    %219 = vector.load %arg5[%c0_67, %c0_68] : memref<64x192xbf16, #tpu.memory_space<vmem>>, vector<64x192xbf16>
    %cst_69 = arith.constant dense<0.000000e+00> : vector<32x192xf32>
    %220 = tpu.matmul %216, %219, %cst_69 {dimension_numbers = #tpu.dot_dimension_numbers<[1], [0], [0], [1], [0, 0, 1, 1], [], []>} : vector<32x64xbf16>, vector<64x192xbf16>, vector<32x192xf32> -> vector<32x192xf32>
    %c0_70 = arith.constant 0 : index
    %c0_71 = arith.constant 0 : index
    %221 = vector.load %arg6[%c0_70, %c0_71] : memref<64x192xbf16, #tpu.memory_space<vmem>>, vector<64x192xbf16>
    %cst_72 = arith.constant dense<0.000000e+00> : vector<32x192xf32>
    %222 = tpu.matmul %218, %221, %cst_72 {dimension_numbers = #tpu.dot_dimension_numbers<[1], [0], [0], [1], [0, 0, 1, 1], [], []>} : vector<32x64xbf16>, vector<64x192xbf16>, vector<32x192xf32> -> vector<32x192xf32>
    %223 = arith.addf %220, %222 : vector<32x192xf32>
    %c0_73 = arith.constant 0 : index
    %c0_74 = arith.constant 0 : index
    %224 = vector.load %arg7[%c0_73, %c0_74] : memref<1x192xf32, #tpu.memory_space<vmem>>, vector<1x192xf32>
    %225 = vector.broadcast %224 : vector<1x192xf32> to vector<32x192xf32>
    %226 = arith.addf %223, %225 : vector<32x192xf32>
    %c0_75 = arith.constant 0 : index
    %c0_76 = arith.constant 0 : index
    %227 = vector.load %arg20[%c0_75, %c0_76] : memref<32x192xf32, #tpu.memory_space<vmem>>, vector<32x192xf32>
    tpu.vector_store %arg20[%c0_75, %c0_76], %226 {strides = array<i32>} : memref<32x192xf32, #tpu.memory_space<vmem>>, vector<32x192xf32>,
    %c0_77 = arith.constant 0 : index
    %c0_78 = arith.constant 0 : index
    %228 = vector.load %arg8[%c0_77, %c0_78] : memref<64x192xbf16, #tpu.memory_space<vmem>>, vector<64x192xbf16>
    %c0_79 = arith.constant 0 : index
    %c0_80 = arith.constant 0 : index
    %229 = vector.load %arg9[%c0_79, %c0_80] : memref<1x192xf32, #tpu.memory_space<vmem>>, vector<1x192xf32>
    %230 = vector.shape_cast %229 : vector<1x192xf32> to vector<1x192xf32>
    %231 = vector.broadcast %230 : vector<1x192xf32> to vector<8x192xf32>
    %cst_81 = arith.constant 0xFF800000 : f32
    %232 = vector.broadcast %cst_81 : f32 to vector<8x64xf32>
    %c0_i32_82 = arith.constant 0 : i32
    %c8_i32_83 = arith.constant 8 : i32
    %233 = arith.muli %c0_i32_82, %c8_i32_83 : i32
    %234 = tpu.assume_multiple %233, 8 : i32
    %235 = arith.index_cast %234 : i32 to index
    %c0_84 = arith.constant 0 : index
    %236 = vector.load %arg20[%235, %c0_84] : memref<32x192xf32, #tpu.memory_space<vmem>>, vector<8x192xf32>
    %237 = arith.truncf %26 : vector<8x64xf32> to vector<8x64xbf16>
    %cst_85 = arith.constant dense<0.000000e+00> : vector<8x192xf32>
    %238 = tpu.matmul %237, %228, %cst_85 {dimension_numbers = #tpu.dot_dimension_numbers<[1], [0], [0], [1], [0, 0, 1, 1], [], []>} : vector<8x64xbf16>, vector<64x192xbf16>, vector<8x192xf32> -> vector<8x192xf32>
    %239 = arith.addf %238, %231 : vector<8x192xf32>
    %240 = vector.extract_strided_slice %236 {offsets = [0, 0], sizes = [8, 64], strides = [1, 1]} : vector<8x192xf32> to vector<8x64xf32>
    %241 = vector.extract_strided_slice %239 {offsets = [0, 0], sizes = [8, 64], strides = [1, 1]} : vector<8x192xf32> to vector<8x64xf32>
    %242 = arith.addf %240, %241 : vector<8x64xf32>
    %243 = arith.negf %242 : vector<8x64xf32>
    %244 = math.exp %243 : vector<8x64xf32>
    %cst_86 = arith.constant 1.000000e+00 : f32
    %245 = vector.broadcast %cst_86 : f32 to vector<8x64xf32>
    %246 = arith.addf %245, %244 : vector<8x64xf32>
    %247 = arith.divf %245, %246 : vector<8x64xf32>
    %248 = vector.extract_strided_slice %236 {offsets = [0, 64], sizes = [8, 64], strides = [1, 1]} : vector<8x192xf32> to vector<8x64xf32>
    %249 = vector.extract_strided_slice %239 {offsets = [0, 64], sizes = [8, 64], strides = [1, 1]} : vector<8x192xf32> to vector<8x64xf32>
    %250 = arith.addf %248, %249 : vector<8x64xf32>
    %251 = arith.negf %250 : vector<8x64xf32>
    %252 = math.exp %251 : vector<8x64xf32>
    %cst_87 = arith.constant 1.000000e+00 : f32
    %253 = vector.broadcast %cst_87 : f32 to vector<8x64xf32>
    %254 = arith.addf %253, %252 : vector<8x64xf32>
    %255 = arith.divf %253, %254 : vector<8x64xf32>
    %256 = vector.extract_strided_slice %236 {offsets = [0, 128], sizes = [8, 64], strides = [1, 1]} : vector<8x192xf32> to vector<8x64xf32>
    %257 = vector.extract_strided_slice %239 {offsets = [0, 128], sizes = [8, 64], strides = [1, 1]} : vector<8x192xf32> to vector<8x64xf32>
    %258 = arith.mulf %247, %257 : vector<8x64xf32>
    %259 = arith.addf %256, %258 : vector<8x64xf32>
    %260 = math.tanh %259 : vector<8x64xf32>
    %261 = arith.subf %26, %260 : vector<8x64xf32>
    %262 = arith.mulf %255, %261 : vector<8x64xf32>
    %263 = arith.addf %260, %262 : vector<8x64xf32>
    %264 = arith.addf %26, %263 : vector<8x64xf32>
    %265 = arith.maximumf %232, %263 : vector<8x64xf32>
    %c1_i32_88 = arith.constant 1 : i32
    %c8_i32_89 = arith.constant 8 : i32
    %266 = arith.muli %c1_i32_88, %c8_i32_89 : i32
    %267 = tpu.assume_multiple %266, 8 : i32
    %268 = arith.index_cast %267 : i32 to index
    %c0_90 = arith.constant 0 : index
    %269 = vector.load %arg20[%268, %c0_90] : memref<32x192xf32, #tpu.memory_space<vmem>>, vector<8x192xf32>
    %270 = arith.truncf %263 : vector<8x64xf32> to vector<8x64xbf16>
    %cst_91 = arith.constant dense<0.000000e+00> : vector<8x192xf32>
    %271 = tpu.matmul %270, %228, %cst_91 {dimension_numbers = #tpu.dot_dimension_numbers<[1], [0], [0], [1], [0, 0, 1, 1], [], []>} : vector<8x64xbf16>, vector<64x192xbf16>, vector<8x192xf32> -> vector<8x192xf32>
    %272 = arith.addf %271, %231 : vector<8x192xf32>
    %273 = vector.extract_strided_slice %269 {offsets = [0, 0], sizes = [8, 64], strides = [1, 1]} : vector<8x192xf32> to vector<8x64xf32>
    %274 = vector.extract_strided_slice %272 {offsets = [0, 0], sizes = [8, 64], strides = [1, 1]} : vector<8x192xf32> to vector<8x64xf32>
    %275 = arith.addf %273, %274 : vector<8x64xf32>
    %276 = arith.negf %275 : vector<8x64xf32>
    %277 = math.exp %276 : vector<8x64xf32>
    %cst_92 = arith.constant 1.000000e+00 : f32
    %278 = vector.broadcast %cst_92 : f32 to vector<8x64xf32>
    %279 = arith.addf %278, %277 : vector<8x64xf32>
    %280 = arith.divf %278, %279 : vector<8x64xf32>
    %281 = vector.extract_strided_slice %269 {offsets = [0, 64], sizes = [8, 64], strides = [1, 1]} : vector<8x192xf32> to vector<8x64xf32>
    %282 = vector.extract_strided_slice %272 {offsets = [0, 64], sizes = [8, 64], strides = [1, 1]} : vector<8x192xf32> to vector<8x64xf32>
    %283 = arith.addf %281, %282 : vector<8x64xf32>
    %284 = arith.negf %283 : vector<8x64xf32>
    %285 = math.exp %284 : vector<8x64xf32>
    %cst_93 = arith.constant 1.000000e+00 : f32
    %286 = vector.broadcast %cst_93 : f32 to vector<8x64xf32>
    %287 = arith.addf %286, %285 : vector<8x64xf32>
    %288 = arith.divf %286, %287 : vector<8x64xf32>
    %289 = vector.extract_strided_slice %269 {offsets = [0, 128], sizes = [8, 64], strides = [1, 1]} : vector<8x192xf32> to vector<8x64xf32>
    %290 = vector.extract_strided_slice %272 {offsets = [0, 128], sizes = [8, 64], strides = [1, 1]} : vector<8x192xf32> to vector<8x64xf32>
    %291 = arith.mulf %280, %290 : vector<8x64xf32>
    %292 = arith.addf %289, %291 : vector<8x64xf32>
    %293 = math.tanh %292 : vector<8x64xf32>
    %294 = arith.subf %263, %293 : vector<8x64xf32>
    %295 = arith.mulf %288, %294 : vector<8x64xf32>
    %296 = arith.addf %293, %295 : vector<8x64xf32>
    %297 = arith.addf %264, %296 : vector<8x64xf32>
    %298 = arith.maximumf %265, %296 : vector<8x64xf32>
    %c2_i32_94 = arith.constant 2 : i32
    %c8_i32_95 = arith.constant 8 : i32
    %299 = arith.muli %c2_i32_94, %c8_i32_95 : i32
    %300 = tpu.assume_multiple %299, 8 : i32
    %301 = arith.index_cast %300 : i32 to index
    %c0_96 = arith.constant 0 : index
    %302 = vector.load %arg20[%301, %c0_96] : memref<32x192xf32, #tpu.memory_space<vmem>>, vector<8x192xf32>
    %303 = arith.truncf %296 : vector<8x64xf32> to vector<8x64xbf16>
    %cst_97 = arith.constant dense<0.000000e+00> : vector<8x192xf32>
    %304 = tpu.matmul %303, %228, %cst_97 {dimension_numbers = #tpu.dot_dimension_numbers<[1], [0], [0], [1], [0, 0, 1, 1], [], []>} : vector<8x64xbf16>, vector<64x192xbf16>, vector<8x192xf32> -> vector<8x192xf32>
    %305 = arith.addf %304, %231 : vector<8x192xf32>
    %306 = vector.extract_strided_slice %302 {offsets = [0, 0], sizes = [8, 64], strides = [1, 1]} : vector<8x192xf32> to vector<8x64xf32>
    %307 = vector.extract_strided_slice %305 {offsets = [0, 0], sizes = [8, 64], strides = [1, 1]} : vector<8x192xf32> to vector<8x64xf32>
    %308 = arith.addf %306, %307 : vector<8x64xf32>
    %309 = arith.negf %308 : vector<8x64xf32>
    %310 = math.exp %309 : vector<8x64xf32>
    %cst_98 = arith.constant 1.000000e+00 : f32
    %311 = vector.broadcast %cst_98 : f32 to vector<8x64xf32>
    %312 = arith.addf %311, %310 : vector<8x64xf32>
    %313 = arith.divf %311, %312 : vector<8x64xf32>
    %314 = vector.extract_strided_slice %302 {offsets = [0, 64], sizes = [8, 64], strides = [1, 1]} : vector<8x192xf32> to vector<8x64xf32>
    %315 = vector.extract_strided_slice %305 {offsets = [0, 64], sizes = [8, 64], strides = [1, 1]} : vector<8x192xf32> to vector<8x64xf32>
    %316 = arith.addf %314, %315 : vector<8x64xf32>
    %317 = arith.negf %316 : vector<8x64xf32>
    %318 = math.exp %317 : vector<8x64xf32>
    %cst_99 = arith.constant 1.000000e+00 : f32
    %319 = vector.broadcast %cst_99 : f32 to vector<8x64xf32>
    %320 = arith.addf %319, %318 : vector<8x64xf32>
    %321 = arith.divf %319, %320 : vector<8x64xf32>
    %322 = vector.extract_strided_slice %302 {offsets = [0, 128], sizes = [8, 64], strides = [1, 1]} : vector<8x192xf32> to vector<8x64xf32>
    %323 = vector.extract_strided_slice %305 {offsets = [0, 128], sizes = [8, 64], strides = [1, 1]} : vector<8x192xf32> to vector<8x64xf32>
    %324 = arith.mulf %313, %323 : vector<8x64xf32>
    %325 = arith.addf %322, %324 : vector<8x64xf32>
    %326 = math.tanh %325 : vector<8x64xf32>
    %327 = arith.subf %296, %326 : vector<8x64xf32>
    %328 = arith.mulf %321, %327 : vector<8x64xf32>
    %329 = arith.addf %326, %328 : vector<8x64xf32>
    %330 = arith.addf %297, %329 : vector<8x64xf32>
    %331 = arith.maximumf %298, %329 : vector<8x64xf32>
    %c3_i32_100 = arith.constant 3 : i32
    %c8_i32_101 = arith.constant 8 : i32
    %332 = arith.muli %c3_i32_100, %c8_i32_101 : i32
    %333 = tpu.assume_multiple %332, 8 : i32
    %334 = arith.index_cast %333 : i32 to index
    %c0_102 = arith.constant 0 : index
    %335 = vector.load %arg20[%334, %c0_102] : memref<32x192xf32, #tpu.memory_space<vmem>>, vector<8x192xf32>
    %336 = arith.truncf %329 : vector<8x64xf32> to vector<8x64xbf16>
    %cst_103 = arith.constant dense<0.000000e+00> : vector<8x192xf32>
    %337 = tpu.matmul %336, %228, %cst_103 {dimension_numbers = #tpu.dot_dimension_numbers<[1], [0], [0], [1], [0, 0, 1, 1], [], []>} : vector<8x64xbf16>, vector<64x192xbf16>, vector<8x192xf32> -> vector<8x192xf32>
    %338 = arith.addf %337, %231 : vector<8x192xf32>
    %339 = vector.extract_strided_slice %335 {offsets = [0, 0], sizes = [8, 64], strides = [1, 1]} : vector<8x192xf32> to vector<8x64xf32>
    %340 = vector.extract_strided_slice %338 {offsets = [0, 0], sizes = [8, 64], strides = [1, 1]} : vector<8x192xf32> to vector<8x64xf32>
    %341 = arith.addf %339, %340 : vector<8x64xf32>
    %342 = arith.negf %341 : vector<8x64xf32>
    %343 = math.exp %342 : vector<8x64xf32>
    %cst_104 = arith.constant 1.000000e+00 : f32
    %344 = vector.broadcast %cst_104 : f32 to vector<8x64xf32>
    %345 = arith.addf %344, %343 : vector<8x64xf32>
    %346 = arith.divf %344, %345 : vector<8x64xf32>
    %347 = vector.extract_strided_slice %335 {offsets = [0, 64], sizes = [8, 64], strides = [1, 1]} : vector<8x192xf32> to vector<8x64xf32>
    %348 = vector.extract_strided_slice %338 {offsets = [0, 64], sizes = [8, 64], strides = [1, 1]} : vector<8x192xf32> to vector<8x64xf32>
    %349 = arith.addf %347, %348 : vector<8x64xf32>
    %350 = arith.negf %349 : vector<8x64xf32>
    %351 = math.exp %350 : vector<8x64xf32>
    %cst_105 = arith.constant 1.000000e+00 : f32
    %352 = vector.broadcast %cst_105 : f32 to vector<8x64xf32>
    %353 = arith.addf %352, %351 : vector<8x64xf32>
    %354 = arith.divf %352, %353 : vector<8x64xf32>
    %355 = vector.extract_strided_slice %335 {offsets = [0, 128], sizes = [8, 64], strides = [1, 1]} : vector<8x192xf32> to vector<8x64xf32>
    %356 = vector.extract_strided_slice %338 {offsets = [0, 128], sizes = [8, 64], strides = [1, 1]} : vector<8x192xf32> to vector<8x64xf32>
    %357 = arith.mulf %346, %356 : vector<8x64xf32>
    %358 = arith.addf %355, %357 : vector<8x64xf32>
    %359 = math.tanh %358 : vector<8x64xf32>
    %360 = arith.subf %329, %359 : vector<8x64xf32>
    %361 = arith.mulf %354, %360 : vector<8x64xf32>
    %362 = arith.addf %359, %361 : vector<8x64xf32>
    %363 = arith.addf %330, %362 : vector<8x64xf32>
    %364 = arith.maximumf %331, %362 : vector<8x64xf32>
    %c4_i32_106 = arith.constant 4 : i32
    %cst_107 = arith.constant 2.500000e-01 : f32
    %365 = vector.broadcast %cst_107 : f32 to vector<8x64xf32>
    %366 = arith.mulf %363, %365 : vector<8x64xf32>
    %367 = vector.extract_strided_slice %362 {offsets = [0, 0], sizes = [8, 32], strides = [1, 1]} : vector<8x64xf32> to vector<8x32xf32>
    %c0_108 = arith.constant 0 : index
    %c0_109 = arith.constant 0 : index
    %368 = vector.load %arg21[%c0_108, %c0_109] : memref<16x32xf32, #tpu.memory_space<vmem>>, vector<8x32xf32>
    tpu.vector_store %arg21[%c0_108, %c0_109], %367 {strides = array<i32>} : memref<16x32xf32, #tpu.memory_space<vmem>>, vector<8x32xf32>,
    %369 = vector.extract_strided_slice %362 {offsets = [0, 32], sizes = [8, 32], strides = [1, 1]} : vector<8x64xf32> to vector<8x32xf32>
    %c8 = arith.constant 8 : index
    %c0_110 = arith.constant 0 : index
    %370 = vector.load %arg21[%c8, %c0_110] : memref<16x32xf32, #tpu.memory_space<vmem>>, vector<8x32xf32>
    tpu.vector_store %arg21[%c8, %c0_110], %369 {strides = array<i32>} : memref<16x32xf32, #tpu.memory_space<vmem>>, vector<8x32xf32>,
    %c0_111 = arith.constant 0 : index
    %c0_112 = arith.constant 0 : index
    %371 = vector.load %arg21[%c0_111, %c0_112] : memref<16x32xf32, #tpu.memory_space<vmem>>, vector<16x32xf32>
    %372 = arith.truncf %371 : vector<16x32xf32> to vector<16x32xbf16>
    %c0_113 = arith.constant 0 : index
    %c0_114 = arith.constant 0 : index
    %373 = vector.load %arg10[%c0_113, %c0_114] : memref<8x16xbf16, #tpu.memory_space<vmem>>, vector<8x16xbf16>
    %cst_115 = arith.constant dense<0.000000e+00> : vector<8x32xf32>
    %374 = tpu.matmul %373, %372, %cst_115 {dimension_numbers = #tpu.dot_dimension_numbers<[1], [0], [0], [1], [0, 0, 1, 1], [], []>} : vector<8x16xbf16>, vector<16x32xbf16>, vector<8x32xf32> -> vector<8x32xf32>
    %c0_116 = arith.constant 0 : index
    %c0_117 = arith.constant 0 : index
    %375 = vector.load %arg22[%c0_116, %c0_117] : memref<8x192xf32, #tpu.memory_space<vmem>>, vector<8x32xf32>
    tpu.vector_store %arg22[%c0_116, %c0_117], %374 {strides = array<i32>} : memref<8x192xf32, #tpu.memory_space<vmem>>, vector<8x32xf32>,
    %c0_118 = arith.constant 0 : index
    %c0_119 = arith.constant 0 : index
    %376 = vector.load %arg11[%c0_118, %c0_119] : memref<8x16xbf16, #tpu.memory_space<vmem>>, vector<8x16xbf16>
    %cst_120 = arith.constant dense<0.000000e+00> : vector<8x32xf32>
    %377 = tpu.matmul %376, %372, %cst_120 {dimension_numbers = #tpu.dot_dimension_numbers<[1], [0], [0], [1], [0, 0, 1, 1], [], []>} : vector<8x16xbf16>, vector<16x32xbf16>, vector<8x32xf32> -> vector<8x32xf32>
    %c0_121 = arith.constant 0 : index
    %c32_122 = arith.constant 32 : index
    %378 = vector.load %arg22[%c0_121, %c32_122] : memref<8x192xf32, #tpu.memory_space<vmem>>, vector<8x32xf32>
    tpu.vector_store %arg22[%c0_121, %c32_122], %377 {strides = array<i32>} : memref<8x192xf32, #tpu.memory_space<vmem>>, vector<8x32xf32>,
    %c0_123 = arith.constant 0 : index
    %c64 = arith.constant 64 : index
    %379 = vector.load %arg22[%c0_123, %c64] : memref<8x192xf32, #tpu.memory_space<vmem>>, vector<8x64xf32>
    tpu.vector_store %arg22[%c0_123, %c64], %366 {strides = array<i32>} : memref<8x192xf32, #tpu.memory_space<vmem>>, vector<8x64xf32>,
    %c0_124 = arith.constant 0 : index
    %c128 = arith.constant 128 : index
    %380 = vector.load %arg22[%c0_124, %c128] : memref<8x192xf32, #tpu.memory_space<vmem>>, vector<8x64xf32>
    tpu.vector_store %arg22[%c0_124, %c128], %364 {strides = array<i32>} : memref<8x192xf32, #tpu.memory_space<vmem>>, vector<8x64xf32>,
    %c0_125 = arith.constant 0 : index
    %c0_126 = arith.constant 0 : index
    %381 = vector.load %arg22[%c0_125, %c0_126] : memref<8x192xf32, #tpu.memory_space<vmem>>, vector<8x192xf32>
    %382 = arith.truncf %381 : vector<8x192xf32> to vector<8x192xbf16>
    %c0_127 = arith.constant 0 : index
    %c0_128 = arith.constant 0 : index
    %383 = vector.load %arg12[%c0_127, %c0_128] : memref<192x64xbf16, #tpu.memory_space<vmem>>, vector<192x64xbf16>
    %cst_129 = arith.constant dense<0.000000e+00> : vector<8x64xf32>
    %384 = tpu.matmul %382, %383, %cst_129 {dimension_numbers = #tpu.dot_dimension_numbers<[1], [0], [0], [1], [0, 0, 1, 1], [], []>} : vector<8x192xbf16>, vector<192x64xbf16>, vector<8x64xf32> -> vector<8x64xf32>
    %c0_130 = arith.constant 0 : index
    %c0_131 = arith.constant 0 : index
    %385 = vector.load %arg13[%c0_130, %c0_131] : memref<1x64xf32, #tpu.memory_space<vmem>>, vector<1x64xf32>
    %386 = vector.broadcast %385 : vector<1x64xf32> to vector<8x64xf32>
    %387 = arith.addf %384, %386 : vector<8x64xf32>
    %cst_132 = arith.constant 0.000000e+00 : f32
    %388 = vector.broadcast %cst_132 : f32 to vector<8x64xf32>
    %389 = arith.maximumf %387, %388 : vector<8x64xf32>
    %390 = arith.truncf %389 : vector<8x64xf32> to vector<8x64xbf16>
    %c0_133 = arith.constant 0 : index
    %c0_134 = arith.constant 0 : index
    %391 = vector.load %arg14[%c0_133, %c0_134] : memref<64x6xbf16, #tpu.memory_space<vmem>>, vector<64x6xbf16>
    %cst_135 = arith.constant dense<0.000000e+00> : vector<8x6xf32>
    %392 = tpu.matmul %390, %391, %cst_135 {dimension_numbers = #tpu.dot_dimension_numbers<[1], [0], [0], [1], [0, 0, 1, 1], [], []>} : vector<8x64xbf16>, vector<64x6xbf16>, vector<8x6xf32> -> vector<8x6xf32>
    %c0_136 = arith.constant 0 : index
    %c0_137 = arith.constant 0 : index
    %393 = vector.load %arg15[%c0_136, %c0_137] : memref<1x6xf32, #tpu.memory_space<vmem>>, vector<1x6xf32>
    %394 = vector.broadcast %393 : vector<1x6xf32> to vector<8x6xf32>
    %395 = arith.addf %392, %394 : vector<8x6xf32>
    %c0_138 = arith.constant 0 : index
    %c0_139 = arith.constant 0 : index
    %396 = vector.load %arg16[%c0_138, %c0_139] : memref<8x6xf32, #tpu.memory_space<vmem>>, vector<8x6xf32>
    tpu.vector_store %arg16[%c0_138, %c0_139], %395 {strides = array<i32>} : memref<8x6xf32, #tpu.memory_space<vmem>>, vector<8x6xf32>,
    return
  }
}

</mosaic_0001>

<bundles_post_ra>
// kernel: tpu_custom_call.1
= control target key start
LH: loop header
LB: loop body
LE: loop exit
PB: predicated region body
PF: predicated region fallthrough
CT: control target
= control target key end

     0   :  { %s3119_s0 = inlined_call_operand.vmem [shape: s32[32,2], index: 0, kind: input, shape index: {}]   ;;  %s3120_s1 = inlined_call_operand.vmem [shape: bf16[100,256], index: 1, kind: input, shape index: {}]   ;;  %s3121_s2 = inlined_call_operand.vmem [shape: bf16[100,256], index: 2, kind: input, shape index: {}]   ;;  %s3122_s3 = inlined_call_operand.vmem [shape: f32[1,256], index: 3, kind: input, shape index: {}]   ;;  %s3123_s4 = inlined_call_operand.hbm [shape: bf16[64,256], index: 4, kind: input, shape index: {}]   ;;  %s3124_s5 = inlined_call_operand.hbm [shape: bf16[64,192], index: 5, kind: input, shape index: {}]   ;;  %s3125_s6 = inlined_call_operand.hbm [shape: bf16[64,192], index: 6, kind: input, shape index: {}]   ;;  %s3126_s7 = inlined_call_operand.hbm [shape: f32[1,192], index: 7, kind: input, shape index: {}]   ;;  %s3127_s8 = inlined_call_operand.hbm [shape: bf16[64,192], index: 8, kind: input, shape index: {}]   ;;  %s3128_s9 = inlined_call_operand.hbm [shape: f32[1,192], index: 9, kind: input, shape index: {}]   ;;  %s3129_s10 = inlined_call_operand.hbm [shape: bf16[8,16], index: 10, kind: input, shape index: {}]   ;;  %s3130_s11 = inlined_call_operand.hbm [shape: bf16[8,16], index: 11, kind: input, shape index: {}]   ;;  %s3131_s12 = inlined_call_operand.vmem [shape: bf16[192,64], index: 12, kind: input, shape index: {}]   ;;  %s3132_s13 = inlined_call_operand.vmem [shape: f32[1,64], index: 13, kind: input, shape index: {}]   ;;  %s3133_s14 = inlined_call_operand.vmem [shape: bf16[64,6], index: 14, kind: input, shape index: {}]   ;;  %s3134_s15 = inlined_call_operand.vmem [shape: f32[1,6], index: 15, kind: input, shape index: {}]   ;;  %s3135_s16 = inlined_call_operand.hbm [shape: f32[8,6], index: 16, kind: output, shape index: {}]  }
   0x1   :  { %3137 = sst [smem:[#allocation29_spill]] %s3119_s0 }
   0x2   :  { %21 = vsyncpa [#allocation9], 0 }
   0x3   :  { %22 = vsyncpa [#allocation12], 0 }
   0x4   :  { %23 = vsyncpa [#allocation15], 0 }
   0x5   :  { %24 = vsyncpa [#allocation18], 0 }
   0x6   :  { %25 = vsyncpa [#allocation21], 0 }
   0x7   :  { %26 = vsyncpa [#allocation10], 0  ;;  %s2453_s21 = smov [#allocation11]   ;;  %s2454_s23 = smov [#allocation14]  }
   0x8   :  { %s52_s22 = sshll.u32 %s2453_s21, 4  ;;  %s77_s24 = sshll.u32 %s2454_s23, 4  ;;  %s53_s22 = int_to_ptr.vmem [resolvable:$true] %s52_s22  ;;  %s78_s24 = int_to_ptr.vmem [resolvable:$true] %s77_s24 }
   0x9   :  { %s2243_s27 = scalar_lea.hbm %s3124_s5, 1024 }
   0xa   :  { %p2244_p0 = scmp.ne.s32.totalorder %s3124_s5, %s2243_s27  ;;  %p2247_p1 = scmp.lt.u32.totalorder %s2243_s27, %s3124_s5 }
   0xc   :  { %p2249_p2 = pnand %p2247_p1, %p2244_p0 }
   0xe   :  { %2252 = shalt.err (!%p2249_p2)
}
   0xf   :  { %s2253_s17 = scalar_lea.vmem %s53_s22, 1024  ;;  %p2258_p4 = scmp.lt.s32.totalorder %s53_s22, %s53_s22 }
  0x10   :  { %p2254_p3 = scmp.ne.s32.totalorder %s53_s22, %s2253_s17  ;;  %p2259_p5 = scmp.lt.s32.totalorder %s2253_s17, %s2253_s17 }
  0x12   :  { %p2260_p6 = por %p2259_p5, %p2258_p4 }
  0x14   :  { %p2261_p7 = pnand %p2260_p6, %p2254_p3 }
  0x16   :  { %2264 = shalt.err (!%p2261_p7)
}
  0x17   :  { %s2455_s18 = smov 128   ;;  %s2456_s19 = smov 8  }
  0x18   :  { %58 = dma.hbm_to_vmem [thread:$0]  %s3124_s5, 1024, %s53_s22, [#allocation12], %s2455_s18, %s2455_s18, %s2456_s19  }
  0x19   :  { %s2265_s26 = scalar_lea.hbm %s3126_s7, 32 }
  0x1a   :  { %p2266_p8 = scmp.ne.s32.totalorder %s3126_s7, %s2265_s26  ;;  %p2269_p9 = scmp.lt.u32.totalorder %s2265_s26, %s3126_s7 }
  0x1c   :  { %p2271_p10 = pnand %p2269_p9, %p2266_p8 }
  0x1e   :  { %2274 = shalt.err (!%p2271_p10)
}
  0x1f   :  { %s2275_s0 = scalar_lea.vmem %s78_s24, 32  ;;  %p2280_p12 = scmp.lt.s32.totalorder %s78_s24, %s78_s24 }
  0x20   :  { %p2276_p11 = scmp.ne.s32.totalorder %s78_s24, %s2275_s0  ;;  %p2281_p13 = scmp.lt.s32.totalorder %s2275_s0, %s2275_s0 }
  0x22   :  { %p2282_p0 = por %p2281_p13, %p2280_p12 }
  0x24   :  { %p2283_p1 = pnand %p2282_p0, %p2276_p11 }
  0x26   :  { %2286 = shalt.err (!%p2283_p1)
}
  0x27   :  { %80 = dma.hbm_to_vmem [thread:$0]  %s3126_s7, 32, %s78_s24, [#allocation15]  }
  0x28   :  { %s2457_s17 = smov [#allocation17]   ;;  %s2458_s21 = smov [#allocation8]  }
  0x29   :  { %s99_s20 = sshll.u32 %s2457_s17, 4  ;;  %s40_s23 = sshll.u32 %s2458_s21, 4  ;;  %s100_s20 = int_to_ptr.vmem [resolvable:$true] %s99_s20  ;;  %s2583_s23 = int_to_ptr.vmem [resolvable:$true] %s40_s23 }
  0x2a   :  { %s2287_s27 = scalar_lea.hbm %s3128_s9, 32 }
  0x2b   :  { %p2288_p2 = scmp.ne.s32.totalorder %s3128_s9, %s2287_s27  ;;  %p2291_p3 = scmp.lt.u32.totalorder %s2287_s27, %s3128_s9 }
  0x2d   :  { %p2293_p4 = pnand %p2291_p3, %p2288_p2 }
  0x2f   :  { %2296 = shalt.err (!%p2293_p4)
}
  0x30   :  { %s2297_s7 = scalar_lea.vmem %s100_s20, 32  ;;  %p2302_p6 = scmp.lt.s32.totalorder %s100_s20, %s100_s20 }
  0x31   :  { %p2298_p5 = scmp.ne.s32.totalorder %s100_s20, %s2297_s7  ;;  %p2303_p7 = scmp.lt.s32.totalorder %s2297_s7, %s2297_s7 }
  0x33   :  { %p2304_p8 = por %p2303_p7, %p2302_p6 }
  0x35   :  { %p2305_p9 = pnand %p2304_p8, %p2298_p5 }
  0x37   :  { %2308 = shalt.err (!%p2305_p9)
}
  0x38   :  { %102 = dma.hbm_to_vmem [thread:$0]  %s3128_s9, 32, %s100_s20, [#allocation18]  }
  0x39   :  { %s2309_s21 = scalar_lea.hbm %s3123_s4, 1024 }
  0x3a   :  { %p2310_p10 = scmp.ne.s32.totalorder %s3123_s4, %s2309_s21  ;;  %p2313_p11 = scmp.lt.u32.totalorder %s2309_s21, %s3123_s4 }
  0x3c   :  { %p2315_p12 = pnand %p2313_p11, %p2310_p10 }
  0x3e   :  { %2318 = shalt.err (!%p2315_p12)
}
  0x3f   :  { %s2319_s29 = scalar_lea.vmem %s2583_s23, 1024  ;;  %p2324_p0 = scmp.lt.s32.totalorder %s2583_s23, %s2583_s23 }
  0x40   :  { %p2320_p13 = scmp.ne.s32.totalorder %s2583_s23, %s2319_s29  ;;  %p2325_p1 = scmp.lt.s32.totalorder %s2319_s29, %s2319_s29 }
  0x42   :  { %p2326_p2 = por %p2325_p1, %p2324_p0 }
  0x44   :  { %p2327_p3 = pnand %p2326_p2, %p2320_p13 }
  0x46   :  { %2330 = shalt.err (!%p2327_p3)
}
  0x47   :  { %46 = dma.hbm_to_vmem [thread:$0]  %s3123_s4, 1024, %s2583_s23, [#allocation9], %s2455_s18, %s2455_s18, %s2456_s19  }
  0x48   :  { %s2459_s30 = smov [#allocation13]   ;;  %s2460_s7 = smov [#allocation16]  }
  0x49   :  { %s64_s0 = sshll.u32 %s2459_s30, 4  ;;  %s86_s24 = sshll.u32 %s2460_s7, 4  ;;  %s65_s0 = int_to_ptr.vmem [resolvable:$true] %s64_s0  ;;  %s2617_s24 = int_to_ptr.vmem [resolvable:$true] %s86_s24 }
  0x4a   :  { %s2331_s17 = scalar_lea.hbm %s3125_s6, 1024 }
  0x4b   :  { %p2332_p4 = scmp.ne.s32.totalorder %s3125_s6, %s2331_s17  ;;  %p2335_p5 = scmp.lt.u32.totalorder %s2331_s17, %s3125_s6 }
  0x4d   :  { %p2337_p6 = pnand %p2335_p5, %p2332_p4 }
  0x4f   :  { %2340 = shalt.err (!%p2337_p6)
}
  0x50   :  { %s2341_s4 = scalar_lea.vmem %s65_s0, 1024  ;;  %p2346_p8 = scmp.lt.s32.totalorder %s65_s0, %s65_s0 }
  0x51   :  { %p2342_p7 = scmp.ne.s32.totalorder %s65_s0, %s2341_s4  ;;  %p2347_p9 = scmp.lt.s32.totalorder %s2341_s4, %s2341_s4 }
  0x53   :  { %p2348_p10 = por %p2347_p9, %p2346_p8 }
  0x55   :  { %p2349_p11 = pnand %p2348_p10, %p2342_p7 }
  0x57   :  { %2352 = shalt.err (!%p2349_p11)
}
  0x58   :  { %70 = dma.hbm_to_vmem [thread:$0]  %s3125_s6, 1024, %s65_s0, [#allocation12], %s2455_s18, %s2455_s18, %s2456_s19  }
  0x59   :  { %s2353_s20 = scalar_lea.hbm %s3127_s8, 1024 }
  0x5a   :  { %p2354_p12 = scmp.ne.s32.totalorder %s3127_s8, %s2353_s20  ;;  %p2357_p13 = scmp.lt.u32.totalorder %s2353_s20, %s3127_s8 }
  0x5c   :  { %p2359_p0 = pnand %p2357_p13, %p2354_p12 }
  0x5e   :  { %2362 = shalt.err (!%p2359_p0)
}
  0x5f   :  { %s2363_s17 = scalar_lea.vmem %s2617_s24, 1024  ;;  %p2368_p2 = scmp.lt.s32.totalorder %s2617_s24, %s2617_s24 }
  0x60   :  { %p2364_p1 = scmp.ne.s32.totalorder %s2617_s24, %s2363_s17  ;;  %p2369_p3 = scmp.lt.s32.totalorder %s2363_s17, %s2363_s17 }
  0x62   :  { %p2370_p4 = por %p2369_p3, %p2368_p2 }
  0x64   :  { %p2371_p5 = pnand %p2370_p4, %p2364_p1 }
  0x66   :  { %2374 = shalt.err (!%p2371_p5)
}
  0x67   :  { %92 = dma.hbm_to_vmem [thread:$0]  %s3127_s8, 1024, %s2617_s24, [#allocation15], %s2455_s18, %s2455_s18, %s2456_s19  }
  0x68   :  { %s2461_s21 = smov [#allocation19]   ;;  %s2462_s26 = smov [#allocation20]  }
  0x69   :  { %s109_s25 = sshll.u32 %s2461_s21, 4  ;;  %s119_s27 = sshll.u32 %s2462_s26, 4  ;;  %s110_s25 = int_to_ptr.vmem [resolvable:$true] %s109_s25  ;;  %s120_s27 = int_to_ptr.vmem [resolvable:$true] %s119_s27 }
  0x6a   :  { %s2375_s28 = scalar_lea.hbm %s3129_s10, 64 }
  0x6b   :  { %p2376_p6 = scmp.ne.s32.totalorder %s3129_s10, %s2375_s28  ;;  %p2379_p7 = scmp.lt.u32.totalorder %s2375_s28, %s3129_s10 }
  0x6d   :  { %p2381_p8 = pnand %p2379_p7, %p2376_p6 }
  0x6f   :  { %2384 = shalt.err (!%p2381_p8)
}
  0x70   :  { %s2385_s8 = scalar_lea.vmem %s110_s25, 64  ;;  %p2390_p10 = scmp.lt.s32.totalorder %s110_s25, %s110_s25 }
  0x71   :  { %p2386_p9 = scmp.ne.s32.totalorder %s110_s25, %s2385_s8  ;;  %p2391_p11 = scmp.lt.s32.totalorder %s2385_s8, %s2385_s8 }
  0x73   :  { %p2392_p12 = por %p2391_p11, %p2390_p10 }
  0x75   :  { %p2393_p13 = pnand %p2392_p12, %p2386_p9 }
  0x77   :  { %2396 = shalt.err (!%p2393_p13)
}
  0x78   :  { %112 = dma.hbm_to_vmem [thread:$0]  %s3129_s10, 64, %s110_s25, [#allocation18]  }
  0x79   :  { %s2397_s5 = scalar_lea.hbm %s3130_s11, 64 }
  0x7a   :  { %p2398_p0 = scmp.ne.s32.totalorder %s3130_s11, %s2397_s5  ;;  %p2401_p1 = scmp.lt.u32.totalorder %s2397_s5, %s3130_s11 }
  0x7c   :  { %p2403_p2 = pnand %p2401_p1, %p2398_p0 }
  0x7e   :  { %2406 = shalt.err (!%p2403_p2)
}
  0x7f   :  { %s2407_s21 = scalar_lea.vmem %s120_s27, 64  ;;  %p2412_p4 = scmp.lt.s32.totalorder %s120_s27, %s120_s27 }
  0x80   :  { %p2408_p3 = scmp.ne.s32.totalorder %s120_s27, %s2407_s21  ;;  %p2413_p5 = scmp.lt.s32.totalorder %s2407_s21, %s2407_s21 }
  0x82   :  { %p2414_p6 = por %p2413_p5, %p2412_p4 }
  0x84   :  { %p2415_p7 = pnand %p2414_p6, %p2408_p3 }
  0x86   :  { %2418 = shalt.err (!%p2415_p7)
}
  0x87   :  { %122 = dma.hbm_to_vmem [thread:$0]  %s3130_s11, 64, %s120_s27, [#allocation21]  }
  0x88   :  { %2441 = dma.done.wait [#allocation9], 1024  }
  0x89   :  { %2442 = vsyncadd [#allocation9], 4294966272 }
  0x8a   :  { %2443 = dma.done.wait [#allocation12], 2048  }
  0x8b   :  { %2444 = vsyncadd [#allocation12], 4294965248 }
  0x8c   :  { %2445 = dma.done.wait [#allocation15], 1056  }
  0x8d   :  { %2446 = vsyncadd [#allocation15], 4294966240 }
  0x8e   :  { %2447 = dma.done.wait [#allocation18], 96  }
  0x8f   :  { %2448 = vsyncadd [#allocation18], 4294967200 }
  0x90   :  { %2449 = dma.done.wait [#allocation21], 64  }
  0x91   :  { %2450 = vsyncadd [#allocation21], 4294967232  ;;  %v2463_v0 = vmov 1   ;;  %v2464_v1 = vmov 0   ;;  %s3138_s27 = sld [smem:[#allocation29_spill]]  ;;  %vm304_vm0 = vcmask 1041408   ;;  %v160_v31 = vlaneseq }
  0x92   :  { %2062 = vset.pattern.permute.xlu0 %v2463_v0  ;;  %2063 = vset.pattern.permute.xlu1 %v2463_v0  ;;  %v2067_v6 = vld [vmem:[%s3121_s2 + $0x4] ss:$8 sps:$4 sm:$0xff]   ;;  %v2069_v7 = vld [vmem:[%s3121_s2] ss:$8 sps:$4 sm:$0xff]   ;;  %v2070_v8 = vld [vmem:[%s3121_s2 + $0x14] ss:$8 sps:$4 sm:$0xff]  }
  0x93   :  { %343 = vmatprep.mubr.bf16.mxu0 %v2464_v1  ;;  %700 = vmatprep.mubr.bf16.mxu1 %v2464_v1  ;;  %v2072_v9 = vld [vmem:[%s3121_s2 + $0x10] ss:$8 sps:$4 sm:$0xff]   ;;  %v2073_v10 = vld [vmem:[%s3121_s2 + $0x24] ss:$8 sps:$4 sm:$0xff]   ;;  %v2075_v11 = vld [vmem:[%s3121_s2 + $0x20] ss:$8 sps:$4 sm:$0xff]  }
  0x94   :  { %311 = vmatprep.subr.bf16.mxu0 %v2067_v6  ;;  %v2076_v12 = vld [vmem:[%s3121_s2 + $0x34] ss:$8 sps:$4 sm:$0xff]   ;;  %v2078_v13 = vld [vmem:[%s3121_s2 + $0x30] ss:$8 sps:$4 sm:$0xff]   ;;  %v2079_v14 = vld [vmem:[%s3121_s2 + $0x44] ss:$8 sps:$4 sm:$0xff]  }
  0x95   :  { %312 = vmatpush1.bf16.msra.mxu0 %v2069_v7  ;;  %v2081_v15 = vld [vmem:[%s3121_s2 + $0x40] ss:$8 sps:$4 sm:$0xff]   ;;  %v2082_v16 = vld [vmem:[%s3121_s2 + $0x54] ss:$8 sps:$4 sm:$0xff]   ;;  %v2084_v18 = vld [vmem:[%s3121_s2 + $0x50] ss:$8 sps:$4 sm:$0xff]  }
  0x96   :  { %313 = vmatprep.subr.bf16.mxu0 %v2070_v8  ;;  %v231_v17 = vld [vmem:[%s3121_s2 + $0x60] sm:$0x33]  ;;  %v2743_v25 = vld [vmem:[#allocation8 + $0x14] ss:$8 sps:$4 sm:$0xff]   ;;  %v2746_v26 = vld [vmem:[#allocation8 + $0x10] ss:$8 sps:$4 sm:$0xff]  }
  0x97   :  { %v156_v2 = vld [vmem:[%s3138_s27] sm:$0xff]  ;;  %v157_v3 = vld [vmem:[%s3138_s27 + $0x8] sm:$0xff]  ;;  %v158_v4 = vld [vmem:[%s3138_s27 + $0x10] sm:$0xff]  ;;  %v1898_v19 = vcombine.high %v231_v17, %v231_v17  ;;  %v1897_v20 = vcombine.low %v231_v17, %v231_v17  ;;  %v2764_v32 = vand.u32 127, %v160_v31  ;;  %v2465_v37 = vmov 0.0   ;;  %s2468_s7 = smov 96  }
  0x98   :  { %185 = vperm.xlu0 %2062, %v156_v2   ;;  %191 = vperm.xlu1 %2063, %v158_v4   ;;  %v159_v5 = vld [vmem:[%s3138_s27 + $0x18] sm:$0xff]  ;;  %v2089_v21 = vld [vmem:[%s3120_s1 + $0x4] ss:$8 sps:$4 sm:$0xff]   ;;  %v2758_v30 = vld [vmem:[#allocation8 + $0x30] ss:$8 sps:$4 sm:$0xff]   ;;  %vm297_vm3 = vcmask 818176  }
  0x99   :  { %314 = vmatpush1.bf16.msra.mxu0 %v2072_v9  ;;  %v306_v22 = vsel %vm304_vm0, %v1897_v20, 0  ;;  %v2738_v23 = vld [vmem:[#allocation8 + $0x4] ss:$8 sps:$4 sm:$0xff]   ;;  %v2740_v24 = vld [vmem:[#allocation8] ss:$8 sps:$4 sm:$0xff]   ;;  %v497_v6 = vshrl.u32 %v160_v31, 7 }
  0x9a   :  { %315 = vmatprep.subr.bf16.mxu0 %v2073_v10  ;;  %668 = vmatprep.subr.bf16.mxu1 %v2738_v23  ;;  %v2750_v27 = vld [vmem:[#allocation8 + $0x24] ss:$8 sps:$4 sm:$0xff]   ;;  %v2752_v28 = vld [vmem:[#allocation8 + $0x20] ss:$8 sps:$4 sm:$0xff]   ;;  %v2755_v29 = vld [vmem:[#allocation8 + $0x34] ss:$8 sps:$4 sm:$0xff]  }
  0x9b   :  { %669 = vmatpush1.bf16.msra.mxu1 %v2740_v24  ;;  %v2087_v40 = vld [vmem:[%s3120_s1] ss:$8 sps:$4 sm:$0xff]   ;;  %v2092_v42 = vld [vmem:[%s3120_s1 + $0x14] ss:$8 sps:$4 sm:$0xff]   ;;  %v2090_v43 = vld [vmem:[%s3120_s1 + $0x10] ss:$8 sps:$4 sm:$0xff]  }
  0x9c   :  { %188 = vperm.xlu0 %2062, %v157_v3   ;;  %194 = vperm.xlu1 %2063, %v159_v5   ;;  %v2095_v46 = vld [vmem:[%s3120_s1 + $0x24] ss:$8 sps:$4 sm:$0xff]   ;;  %v2093_v48 = vld [vmem:[%s3120_s1 + $0x20] ss:$8 sps:$4 sm:$0xff]   ;;  %v2098_v49 = vld [vmem:[%s3120_s1 + $0x34] ss:$8 sps:$4 sm:$0xff]  }
  0x9d   :  { %316 = vmatpush1.bf16.msra.mxu0 %v2075_v11  ;;  %670 = vmatprep.subr.bf16.mxu1 %v2743_v25  ;;  %v2096_v50 = vld [vmem:[%s3120_s1 + $0x30] ss:$8 sps:$4 sm:$0xff]   ;;  %v2101_v51 = vld [vmem:[%s3120_s1 + $0x44] ss:$8 sps:$4 sm:$0xff]   ;;  %v2099_v52 = vld [vmem:[%s3120_s1 + $0x40] ss:$8 sps:$4 sm:$0xff]  }
  0x9e   :  { %317 = vmatprep.subr.bf16.mxu0 %v2076_v12  ;;  %v2104_v53 = vld [vmem:[%s3120_s1 + $0x54] ss:$8 sps:$4 sm:$0xff]   ;;  %v218_v54 = vld [vmem:[%s3120_s1 + $0x60] sm:$0x33]  ;;  %v2102_v57 = vld [vmem:[%s3120_s1 + $0x50] ss:$8 sps:$4 sm:$0xff]  }
  0x9f   :  { %671 = vmatpush1.bf16.msra.mxu1 %v2746_v26  ;;  %v1915_v58 = vcombine.high %v218_v54, %v218_v54  ;;  %v1914_v59 = vcombine.low %v218_v54, %v218_v54  ;;  %v2839_v7 = vsub.s32 0, %v497_v6  ;;  %v494_v8 = vld [vmem:[%s3122_s3] sm:$0x3]  ;;  %v2844_v9 = vsub.s32 1, %v497_v6  ;;  %s2466_s3 = smov 64   ;;  %s2469_s5 = smov 32  }
  0xa0   :  { %2065 = vset.pattern.permute.xlu1 %v2464_v1  ;;  %2064 = vset.pattern.permute.xlu0 %v2464_v1  ;;  %vm575_vm10 = vcmask 523264   ;;  %vm648_vm11 = vcmask 261120   ;;  %vm651_vm12 = vcmask 523520   ;;  %vm2467_vm13 = vmmov 0   ;;  %s2470_s27 = smov [#allocation22]  }
  0xa1   :  { %166 = vperm.xlu1 %2065, %v157_v3   ;;  %163 = vperm.xlu0 %2064, %v156_v2   ;;  %v436_v62 = vsel %vm304_vm0, %v1914_v59, 0  ;;  %v499_v11 = vrot.slane %v494_v8, %v2839_v7  ;;  %vm1523_vm14 = vcmask 130048   ;;  %vm1621_vm15 = vcmask 1048064  }
  0xa2   :  { %318 = vmatpush1.bf16.msra.mxu0 %v2078_v13  ;;  %672 = vmatprep.subr.bf16.mxu1 %v2750_v27  ;;  %v503_v13 = vrot.slane %v494_v8, %v2844_v9 }
  0xa3   :  { %319 = vmatprep.subr.bf16.mxu0 %v2079_v14  ;;  %673 = vmatpush1.bf16.msra.mxu1 %v2752_v28 }
  0xa4   :  { %674 = vmatprep.subr.bf16.mxu1 %v2755_v29 }
  0xa5   :  { %169 = vperm.xlu1 %2065, %v158_v4   ;;  %172 = vperm.xlu0 %2064, %v159_v5  }
  0xa6   :  { %320 = vmatpush1.bf16.msra.mxu0 %v2081_v15 }
  0xa7   :  { %321 = vmatprep.subr.bf16.mxu0 %v2082_v16  ;;  %675 = vmatpush1.bf16.msra.mxu1 %v2758_v30 }
  0xa8   :  { %757 = vmatprep.subr.bf16.mxu1 %v2738_v23 }
  0xa9   :  { %2066 = vset.pattern.permute.xlu0 %v2463_v0 }
  0xaa   :  { %322 = vmatpush1.bf16.msra.mxu0 %v2084_v18 }
  0xab   :  { %1899 = vmatprep.subr.msk.bf16.mxu0 %vm304_vm0, %v1898_v19 }
  0xae   :  { %324 = vmatpush1.bf16.msra.mxu0 %v306_v22 }
  0xaf   :  { %441 = vmatprep.subr.bf16.mxu0 %v2089_v21 }
 0x117   :  { %v186_v33 = vpop.permute.xlu0 %185  ;;  %v192_v34 = vpop.permute.xlu1 %191 }
 0x118   :  { %vm196_vm1 = vcmp.eq.s32.totalorder %v186_v33, %v2764_v32  ;;  %vm198_vm4 = vcmp.eq.s32.totalorder %v192_v34, %v2764_v32 }
 0x119   :  { %v200_v38 = vsel %vm196_vm1, 1.0, %v2465_v37  ;;  %v202_v44 = vsel %vm198_vm4, 1.0, %v2465_v37 }
 0x11b   :  { %v189_v35 = vpop.permute.xlu0 %188  ;;  %v195_v36 = vpop.permute.xlu1 %194 }
 0x11c   :  { %vm197_vm2 = vcmp.eq.s32.totalorder %v189_v35, %v2764_v32  ;;  %vm199_vm5 = vcmp.eq.s32.totalorder %v195_v36, %v2764_v32 }
 0x11d   :  { %v201_v39 = vsel %vm197_vm2, 1.0, %v2465_v37  ;;  %v203_v45 = vsel %vm199_vm5, 1.0, %v2465_v37 }
 0x11e   :  { %v204_v41 = vpack.c.bf16 %v201_v39, %v200_v38  ;;  %v205_v47 = vpack.c.bf16 %v203_v45, %v202_v44 }
 0x120   :  { %1900 = vmatmul.mubr.msk.bf16.vlgmr.msra.gmra.mrb[0].mxu0 %vm297_vm3, %v204_v41  ;;  %v167_v55 = vpop.permute.xlu1 %166  ;;  %v164_v56 = vpop.permute.xlu0 %163 }
 0x121   :  { %442 = vmatpush1.bf16.msra.mxu0 %v2087_v40  ;;  %353 = vmatprep.mubr.bf16.mxu0 %v2464_v1  ;;  %vm175_vm6 = vcmp.eq.s32.totalorder %v167_v55, %v2764_v32  ;;  %vm174_vm7 = vcmp.eq.s32.totalorder %v164_v56, %v2764_v32 }
 0x122   :  { %443 = vmatprep.subr.bf16.mxu0 %v2092_v42  ;;  %v179_v60 = vsel %vm175_vm6, 1.0, %v2465_v37  ;;  %v178_v61 = vsel %vm174_vm7, 1.0, %v2465_v37 }
 0x123   :  { %v182_v63 = vpack.c.bf16 %v179_v60, %v178_v61 }
 0x124   :  { %v170_v0 = vpop.permute.xlu1 %169  ;;  %v173_v2 = vpop.permute.xlu0 %172 }
 0x125   :  { %444 = vmatpush1.bf16.msra.mxu0 %v2090_v43  ;;  %vm176_vm8 = vcmp.eq.s32.totalorder %v170_v0, %v2764_v32  ;;  %vm177_vm9 = vcmp.eq.s32.totalorder %v173_v2, %v2764_v32 }
 0x126   :  { %445 = vmatprep.subr.bf16.mxu0 %v2095_v46  ;;  %v180_v3 = vsel %vm176_vm8, 1.0, %v2465_v37  ;;  %v181_v4 = vsel %vm177_vm9, 1.0, %v2465_v37 }
 0x127   :  { %v183_v5 = vpack.c.bf16 %v181_v4, %v180_v3 }
 0x128   :  { %1901 = vmatmul.mubr.msk.bf16.gmra.mrb[4].mxu0 %vm297_vm3, %v205_v47 }
 0x129   :  { %446 = vmatpush1.bf16.msra.mxu0 %v2093_v48  ;;  %473 = vmatprep.mubr.bf16.mxu0 %v2464_v1 }
 0x12a   :  { %447 = vmatprep.subr.bf16.mxu0 %v2098_v49 }
 0x12d   :  { %448 = vmatpush1.bf16.msra.mxu0 %v2096_v50 }
 0x12e   :  { %449 = vmatprep.subr.bf16.mxu0 %v2101_v51 }
 0x131   :  { %450 = vmatpush1.bf16.msra.mxu0 %v2099_v52 }
 0x132   :  { %451 = vmatprep.subr.bf16.mxu0 %v2104_v53 }
 0x135   :  { %452 = vmatpush1.bf16.msra.mxu0 %v2102_v57 }
 0x136   :  { %1916 = vmatprep.subr.msk.bf16.mxu0 %vm304_vm0, %v1915_v58  ;;  %vm1858_vm0 = vcmask 48128  }
 0x139   :  { %454 = vmatpush1.bf16.msra.mxu0 %v436_v62 }
 0x13a   :  { %579 = vmatprep.subr.bf16.mxu0 %v2738_v23 }
 0x13c   :  { %1917 = vmatmul.mubr.msk.bf16.vlgmr.msra.gmra.mrb[0].mxu0 %vm297_vm3, %v182_v63 }
 0x13d   :  { %580 = vmatpush1.bf16.msra.mxu0 %v2740_v24  ;;  %483 = vmatprep.mubr.bf16.mxu0 %v2464_v1 }
 0x13e   :  { %581 = vmatprep.subr.bf16.mxu0 %v2743_v25 }
 0x141   :  { %582 = vmatpush1.bf16.msra.mxu0 %v2746_v26 }
 0x142   :  { %583 = vmatprep.subr.bf16.mxu0 %v2750_v27 }
 0x144   :  { %1918 = vmatmul.mubr.msk.bf16.gmra.mrb[4].mxu0 %vm297_vm3, %v183_v5 }
 0x145   :  { %584 = vmatpush1.bf16.msra.mxu0 %v2752_v28  ;;  %611 = vmatprep.mubr.bf16.mxu0 %v2464_v1 }
 0x146   :  { %585 = vmatprep.subr.bf16.mxu0 %v2755_v29 }
 0x149   :  { %586 = vmatpush1.bf16.msra.mxu0 %v2758_v30 }
 0x14c   :  { %612 = vmatmul.mubr.bf16.vlgmr.msra.gmra.mrb[8].mxu0 %v2464_v1 }
 0x14d   :  { %1021 = vmatprep.mubr.bf16.mxu0 %v2464_v1 }
 0x20f   :  { %v475_v10 = vpop.f32.mrb[0].mxu0 }
 0x210   :  { %v477_v12 = vpop.f32.mrb[1].mxu0  ;;  %v506_v34 = vadd.f32 %v499_v11, %v475_v10 }
 0x211   :  { %v479_v14 = vpop.f32.mrb[2].mxu0  ;;  %v507_v35 = vadd.f32 %v503_v13, %v477_v12 }
 0x212   :  { %v508_v15 = vadd.f32 %v499_v11, %v479_v14  ;;  %v481_v16 = vpop.f32.mrb[3].mxu0 }
 0x213   :  { %v509_v17 = vadd.f32 %v503_v13, %v481_v16 }
 0x217   :  { %v485_v18 = vpop.f32.mrb[4].mxu0 }
 0x218   :  { %v2848_v19 = vadd.f32 %v499_v11, %v485_v18  ;;  %v487_v20 = vpop.f32.mrb[5].mxu0 }
 0x219   :  { %v2850_v21 = vadd.f32 %v503_v13, %v487_v20  ;;  %v489_v22 = vpop.f32.mrb[6].mxu0 }
 0x21a   :  { %v2852_v31 = vadd.f32 %v499_v11, %v489_v22  ;;  %v491_v32 = vpop.f32.mrb[7].mxu0 }
 0x21b   :  { %v2854_v33 = vadd.f32 %v503_v13, %v491_v32 }
 0x21f   :  { %v613_v36 = vpop.f32.mrb[8].mxu0 }
 0x220   :  { %v620_v38 = vadd.f32 %v613_v36, %v506_v34  ;;  %v615_v39 = vpop.f32.mrb[9].mxu0 }
 0x221   :  { %v621_v40 = vadd.f32 %v615_v39, %v507_v35  ;;  %v617_v41 = vpop.f32.mrb[10].mxu0 }
 0x222   :  { %v1927_v42 = vmul.f32 -1.442695, %v620_v38  ;;  %v618_v43 = vpop.f32.mrb[11].mxu0 }
 0x223   :  { %v1928_v49 = vmul.f32 -1.442695, %v621_v40 }
 0x224   :  { %2171 = vpow2.f32 %v1927_v42 }
 0x225   :  { %2173 = vtanh.f32 %v621_v40 }
 0x22e   :  { %v2172_v44 = vpop.eup %2171 }
 0x22f   :  { %v625_v45 = vadd.f32 1.0, %v2172_v44  ;;  %v2174_v46 = vpop.eup %2173 }
 0x231   :  { %2175 = vrcp.f32 %v625_v45 }
 0x232   :  { %2177 = vpow2.f32 %v1928_v49 }
 0x23b   :  { %v2176_v47 = vpop.eup %2175 }
 0x23c   :  { %v636_v48 = vmul.f32 %v2176_v47, %v2174_v46  ;;  %v2178_v50 = vpop.eup %2177  ;;  %v635_v52 = vmul.f32 0.0, %v2176_v47 }
 0x23d   :  { %v632_v51 = vadd.f32 1.0, %v2178_v50 }
 0x23e   :  { %638 = vrot.lane.b32.xlu1 %v636_v48, %s2466_s3 }
 0x23f   :  { %2179 = vrcp.f32 %v632_v51 }
 0x249   :  { %v2180_v55 = vpop.eup %2179 }
 0x2b0   :  { %v639_v53 = vpop.permute.xlu1 %638 }
 0x2b1   :  { %v641_v54 = vadd.f32 %v639_v53, %v635_v52 }
 0x2b3   :  { %2181 = vtanh.f32 %v641_v54 }
 0x2bd   :  { %v2182_v56 = vpop.eup %2181 }
 0x2be   :  { %v2857_v57 = vmul.f32 %v2182_v56, %v2180_v55 }
 0x2c0   :  { %v661_v58 = vpack.c.bf16 %v2857_v57, %v2857_v57 }
 0x2c2   :  { %663 = vrot.lane.b32.xlu0 %v661_v58, %s2466_s3 }
 0x334   :  { %v664_v59 = vpop.permute.xlu0 %663 }
 0x335   :  { %1929 = vmatmul.mubr.msk.bf16.vlgmr.msra.gmra.mrb[0].mxu1 %vm575_vm10, %v664_v59 }
 0x336   :  { %758 = vmatpush1.bf16.msra.mxu1 %v2740_v24  ;;  %789 = vmatprep.mubr.bf16.mxu1 %v2464_v1 }
 0x337   :  { %759 = vmatprep.subr.bf16.mxu1 %v2743_v25 }
 0x33a   :  { %760 = vmatpush1.bf16.msra.mxu1 %v2746_v26 }
 0x33b   :  { %761 = vmatprep.subr.bf16.mxu1 %v2750_v27 }
 0x33e   :  { %762 = vmatpush1.bf16.msra.mxu1 %v2752_v28 }
 0x33f   :  { %763 = vmatprep.subr.bf16.mxu1 %v2755_v29 }
 0x342   :  { %764 = vmatpush1.bf16.msra.mxu1 %v2758_v30 }
 0x343   :  { %842 = vmatprep.subr.bf16.mxu1 %v2738_v23 }
 0x408   :  { %v702_v60 = vpop.f32.mrb[0].mxu1 }
 0x409   :  { %v709_v61 = vadd.f32 %v702_v60, %v508_v15  ;;  %v704_v62 = vpop.f32.mrb[1].mxu1 }
 0x40a   :  { %v710_v63 = vadd.f32 %v704_v62, %v509_v17  ;;  %v706_v0 = vpop.f32.mrb[2].mxu1  ;;  %v2121_v62 = vld [vmem:[#allocation13 + $0x4] ss:$8 sps:$4 sm:$0xff]  }
 0x40b   :  { %v1930_v2 = vmul.f32 -1.442695, %v709_v61  ;;  %v707_v3 = vpop.f32.mrb[3].mxu1  ;;  %v2119_v61 = vld [vmem:[#allocation13] ss:$8 sps:$4 sm:$0xff]   ;;  %989 = vmatprep.subr.bf16.mxu0 %v2121_v62 }
 0x40c   :  { %v1931_v11 = vmul.f32 -1.442695, %v710_v63  ;;  %990 = vmatpush1.bf16.msra.mxu0 %v2119_v61 }
 0x40d   :  { %2183 = vpow2.f32 %v1930_v2 }
 0x40e   :  { %2185 = vtanh.f32 %v710_v63  ;;  %v2124_v63 = vld [vmem:[#allocation13 + $0x14] ss:$8 sps:$4 sm:$0xff]  }
 0x40f   :  { %991 = vmatprep.subr.bf16.mxu0 %v2124_v63 }
 0x417   :  { %v2184_v4 = vpop.eup %2183 }
 0x418   :  { %v714_v5 = vadd.f32 1.0, %v2184_v4  ;;  %v2186_v6 = vpop.eup %2185 }
 0x41a   :  { %2187 = vrcp.f32 %v714_v5 }
 0x41b   :  { %2189 = vpow2.f32 %v1931_v11  ;;  %v2130_v11 = vld [vmem:[#allocation13 + $0x34] ss:$8 sps:$4 sm:$0xff]  }
 0x424   :  { %v2188_v8 = vpop.eup %2187 }
 0x425   :  { %v725_v10 = vmul.f32 %v2188_v8, %v2186_v6  ;;  %v2190_v23 = vpop.eup %2189  ;;  %v724_v13 = vmul.f32 %v2188_v8, %v641_v54  ;;  %v2125_v6 = vld [vmem:[#allocation13 + $0x20] ss:$8 sps:$4 sm:$0xff]   ;;  %v2127_v8 = vld [vmem:[#allocation13 + $0x24] ss:$8 sps:$4 sm:$0xff]  }
 0x426   :  { %v721_v12 = vadd.f32 1.0, %v2190_v23 }
 0x427   :  { %727 = vrot.lane.b32.xlu1 %v725_v10, %s2466_s3 }
 0x428   :  { %2191 = vrcp.f32 %v721_v12  ;;  %v2128_v12 = vld [vmem:[#allocation13 + $0x30] ss:$8 sps:$4 sm:$0xff]  }
 0x432   :  { %v2192_v16 = vpop.eup %2191 }
 0x499   :  { %v728_v14 = vpop.permute.xlu1 %727 }
 0x49a   :  { %v730_v15 = vadd.f32 %v728_v14, %v724_v13  ;;  %v2913_v13 = vld [vmem:[#allocation16 + $0x4] ss:$8 sps:$4 sm:$0xff]   ;;  %v2915_v14 = vld [vmem:[#allocation16] ss:$8 sps:$4 sm:$0xff]  }
 0x49c   :  { %2193 = vtanh.f32 %v730_v15 }
 0x4a6   :  { %v2194_v17 = vpop.eup %2193 }
 0x4a7   :  { %v2873_v18 = vmul.f32 %v2194_v17, %v2192_v16  ;;  %v2919_v17 = vld [vmem:[#allocation16 + $0x14] ss:$8 sps:$4 sm:$0xff]  }
 0x4a9   :  { %v750_v20 = vpack.c.bf16 %v2873_v18, %v2873_v18 }
 0x4ab   :  { %752 = vrot.lane.b32.xlu0 %v750_v20, %s2466_s3  ;;  %v2921_v20 = vld [vmem:[#allocation16 + $0x10] ss:$8 sps:$4 sm:$0xff]  }
 0x51d   :  { %v753_v22 = vpop.permute.xlu0 %752 }
 0x51e   :  { %1932 = vmatmul.mubr.msk.bf16.vlgmr.msra.gmra.mrb[4].mxu1 %vm575_vm10, %v753_v22 }
 0x51f   :  { %843 = vmatpush1.bf16.msra.mxu1 %v2740_v24  ;;  %874 = vmatprep.mubr.bf16.mxu1 %v2464_v1 }
 0x520   :  { %844 = vmatprep.subr.bf16.mxu1 %v2743_v25 }
 0x523   :  { %845 = vmatpush1.bf16.msra.mxu1 %v2746_v26 }
 0x524   :  { %846 = vmatprep.subr.bf16.mxu1 %v2750_v27 }
 0x527   :  { %847 = vmatpush1.bf16.msra.mxu1 %v2752_v28 }
 0x528   :  { %848 = vmatprep.subr.bf16.mxu1 %v2755_v29 }
 0x52b   :  { %849 = vmatpush1.bf16.msra.mxu1 %v2758_v30 }
 0x52c   :  { %1233 = vmatprep.subr.bf16.mxu1 %v2913_v13 }
 0x5f1   :  { %v791_v32 = vpop.f32.mrb[4].mxu1 }
 0x5f2   :  { %v798_v34 = vadd.f32 %v791_v32, %v2848_v19  ;;  %v793_v35 = vpop.f32.mrb[5].mxu1  ;;  %v2926_v32 = vld [vmem:[#allocation16 + $0x24] ss:$8 sps:$4 sm:$0xff]  }
 0x5f3   :  { %v799_v24 = vadd.f32 %v793_v35, %v2850_v21  ;;  %v795_v36 = vpop.f32.mrb[6].mxu1  ;;  %v2932_v35 = vld [vmem:[#allocation16 + $0x34] ss:$8 sps:$4 sm:$0xff]  }
 0x5f4   :  { %v1933_v38 = vmul.f32 -1.442695, %v798_v34  ;;  %v796_v39 = vpop.f32.mrb[7].mxu1  ;;  %v2928_v34 = vld [vmem:[#allocation16 + $0x20] ss:$8 sps:$4 sm:$0xff]  }
 0x5f5   :  { %v1934_v29 = vmul.f32 -1.442695, %v799_v24 }
 0x5f6   :  { %2195 = vpow2.f32 %v1933_v38 }
 0x5f7   :  { %2197 = vtanh.f32 %v799_v24  ;;  %v2934_v24 = vld [vmem:[#allocation16 + $0x30] ss:$8 sps:$4 sm:$0xff]  }
 0x600   :  { %v2196_v25 = vpop.eup %2195 }
 0x601   :  { %v803_v26 = vadd.f32 1.0, %v2196_v25  ;;  %v2198_v27 = vpop.eup %2197  ;;  %v2131_v25 = vld [vmem:[#allocation11] ss:$8 sps:$4 sm:$0xff]  }
 0x603   :  { %2199 = vrcp.f32 %v803_v26 }
 0x604   :  { %2201 = vpow2.f32 %v1934_v29 }
 0x60d   :  { %v2200_v28 = vpop.eup %2199 }
 0x60e   :  { %v814_v40 = vmul.f32 %v2200_v28, %v2198_v27  ;;  %v2202_v30 = vpop.eup %2201  ;;  %v813_v41 = vmul.f32 %v2200_v28, %v730_v15  ;;  %v2133_v15 = vld [vmem:[#allocation11 + $0x4] ss:$8 sps:$4 sm:$0xff]   ;;  %v2136_v27 = vld [vmem:[#allocation11 + $0x14] ss:$8 sps:$4 sm:$0xff]   ;;  %v2134_v28 = vld [vmem:[#allocation11 + $0x10] ss:$8 sps:$4 sm:$0xff]  }
 0x60f   :  { %v810_v19 = vadd.f32 1.0, %v2202_v30 }
 0x610   :  { %816 = vrot.lane.b32.xlu1 %v814_v40, %s2466_s3  ;;  %v2142_v40 = vld [vmem:[#allocation11 + $0x24] ss:$8 sps:$4 sm:$0xff]  }
 0x611   :  { %2203 = vrcp.f32 %v810_v19  ;;  %v2140_v19 = vld [vmem:[#allocation11 + $0x20] ss:$8 sps:$4 sm:$0xff]  }
 0x61b   :  { %v2204_v43 = vpop.eup %2203 }
 0x682   :  { %v817_v42 = vpop.permute.xlu1 %816 }
 0x683   :  { %v819_v21 = vadd.f32 %v817_v42, %v813_v41  ;;  %v2148_v42 = vld [vmem:[#allocation11 + $0x34] ss:$8 sps:$4 sm:$0xff]  }
 0x685   :  { %2205 = vtanh.f32 %v819_v21 }
 0x68f   :  { %v2206_v44 = vpop.eup %2205 }
 0x690   :  { %v821_v45 = vmul.f32 %v2206_v44, %v2204_v43 }
 0x692   :  { %v835_v46 = vpack.c.bf16 %v821_v45, %v821_v45 }
 0x694   :  { %837 = vrot.lane.b32.xlu0 %v835_v46, %s2466_s3 }
 0x698   :  { %645 = vrot.lane.b32.xlu0 %v2857_v57, %s2466_s3 }
 0x69c   :  { %823 = vrot.lane.b32.xlu0 %v821_v45, %s2466_s3 }
 0x706   :  { %v838_v47 = vpop.permute.xlu0 %837 }
 0x707   :  { %1935 = vmatmul.mubr.msk.bf16.vlgmr.msra.gmra.mrb[8].mxu1 %vm575_vm10, %v838_v47 }
 0x708   :  { %1265 = vmatprep.mubr.bf16.mxu1 %v2464_v1  ;;  %1234 = vmatpush1.bf16.msra.mxu1 %v2915_v14 }
 0x709   :  { %1235 = vmatprep.subr.bf16.mxu1 %v2919_v17 }
 0x70a   :  { %v646_v48 = vpop.permute.xlu0 %645 }
 0x70b   :  { %649 = vst.msk [vmem:[#allocation3] sm:$0xff] %vm648_vm11, %v646_v48  ;;  %654 = vst.msk [vmem:[#allocation4 + $0x18] sm:$0xff] %vm648_vm11, %v646_v48 }
 0x70c   :  { %652 = vst.msk [vmem:[#allocation3 + $0x18] sm:$0xff] %vm651_vm12, %v646_v48  ;;  %655 = vst.msk [vmem:[#allocation4] sm:$0xff] %vm651_vm12, %v646_v48  ;;  %1236 = vmatpush1.bf16.msra.mxu1 %v2921_v20 }
 0x70d   :  { %1237 = vmatprep.subr.bf16.mxu1 %v2926_v32 }
 0x70e   :  { %v824_v23 = vpop.permute.xlu0 %823 }
 0x710   :  { %1238 = vmatpush1.bf16.msra.mxu1 %v2928_v34 }
 0x711   :  { %1239 = vmatprep.subr.bf16.mxu1 %v2932_v35 }
 0x714   :  { %1240 = vmatpush1.bf16.msra.mxu1 %v2934_v24 }
 0x715   :  { %1304 = vmatprep.subr.bf16.mxu1 %v2913_v13 }
 0x717   :  { %1266 = vmatmul.mubr.bf16.vlgmr.msra.gmra.mrb[12].mxu1 %v2464_v1 }
 0x718   :  { %1305 = vmatpush1.bf16.msra.mxu1 %v2915_v14  ;;  %1336 = vmatprep.mubr.bf16.mxu1 %v2464_v1 }
 0x719   :  { %1306 = vmatprep.subr.bf16.mxu1 %v2919_v17 }
 0x71c   :  { %1307 = vmatpush1.bf16.msra.mxu1 %v2921_v20 }
 0x71d   :  { %1308 = vmatprep.subr.bf16.mxu1 %v2926_v32 }
 0x720   :  { %1309 = vmatpush1.bf16.msra.mxu1 %v2928_v34 }
 0x721   :  { %1310 = vmatprep.subr.bf16.mxu1 %v2932_v35 }
 0x724   :  { %1311 = vmatpush1.bf16.msra.mxu1 %v2934_v24 }
 0x725   :  { %1448 = vmatprep.subr.bf16.mxu1 %v2913_v13 }
 0x7da   :  { %v876_v49 = vpop.f32.mrb[8].mxu1 }
 0x7db   :  { %v883_v50 = vadd.f32 %v876_v49, %v2852_v31  ;;  %v878_v51 = vpop.f32.mrb[9].mxu1  ;;  %v2122_v31 = vld [vmem:[#allocation13 + $0x10] ss:$8 sps:$4 sm:$0xff]  }
 0x7dc   :  { %v884_v52 = vadd.f32 %v878_v51, %v2854_v33  ;;  %v880_v53 = vpop.f32.mrb[10].mxu1  ;;  %992 = vmatpush1.bf16.msra.mxu0 %v2122_v31 }
 0x7dd   :  { %v1936_v54 = vmul.f32 -1.442695, %v883_v50  ;;  %v881_v55 = vpop.f32.mrb[11].mxu1  ;;  %993 = vmatprep.subr.bf16.mxu0 %v2127_v8  ;;  %v1177_v53 = vld [vmem:[#allocation17] sm:$0x3] }
 0x7de   :  { %v1937_v33 = vmul.f32 -1.442695, %v884_v52  ;;  %v2971_v55 = vrot.slane %v1177_v53, %v2839_v7 }
 0x7df   :  { %2207 = vpow2.f32 %v1936_v54  ;;  %v1141_v54 = vld [vmem:[#allocation14] sm:$0x3] }
 0x7e0   :  { %2209 = vtanh.f32 %v884_v52  ;;  %994 = vmatpush1.bf16.msra.mxu0 %v2125_v6 }
 0x7e1   :  { %995 = vmatprep.subr.bf16.mxu0 %v2130_v11 }
 0x7e4   :  { %996 = vmatpush1.bf16.msra.mxu0 %v2128_v12 }
 0x7e5   :  { %1088 = vmatprep.subr.bf16.mxu0 %v2133_v15  ;;  %v2985_v15 = vrot.slane %v1177_v53, %v2844_v9 }
 0x7e9   :  { %v2208_v56 = vpop.eup %2207 }
 0x7ea   :  { %v888_v57 = vadd.f32 1.0, %v2208_v56  ;;  %v2210_v58 = vpop.eup %2209  ;;  %v1267_v49 = vpop.f32.mrb[12].mxu1  ;;  %v1146_v56 = vrot.slane %v1141_v54, %v2839_v7 }
 0x7eb   :  { %v1269_v50 = vpop.f32.mrb[13].mxu1 }
 0x7ec   :  { %2211 = vrcp.f32 %v888_v57  ;;  %v1271_v51 = vpop.f32.mrb[14].mxu1  ;;  %v1150_v57 = vrot.slane %v1141_v54, %v2844_v9 }
 0x7ed   :  { %2213 = vpow2.f32 %v1937_v33  ;;  %v1272_v52 = vpop.f32.mrb[15].mxu1 }
 0x7f6   :  { %v2212_v59 = vpop.eup %2211 }
 0x7f7   :  { %v899_v60 = vmul.f32 %v2212_v59, %v2210_v58  ;;  %v2214_v0 = vpop.eup %2213  ;;  %v898_v3 = vmul.f32 %v2212_v59, %v819_v21  ;;  %v2146_v21 = vld [vmem:[#allocation11 + $0x30] ss:$8 sps:$4 sm:$0xff]   ;;  %v1268_v58 = vadd.f32 %v1267_v49, %v2971_v55 }
 0x7f8   :  { %v895_v2 = vadd.f32 1.0, %v2214_v0 }
 0x7f9   :  { %901 = vrot.lane.b32.xlu1 %v899_v60, %s2466_s3 }
 0x7fa   :  { %2215 = vrcp.f32 %v895_v2 }
 0x7fd   :  { %734 = vrot.lane.b32.xlu1 %v2873_v18, %s2466_s3 }
 0x804   :  { %v2216_v16 = vpop.eup %2215 }
 0x86b   :  { %v902_v4 = vpop.permute.xlu1 %901 }
 0x86c   :  { %v904_v5 = vadd.f32 %v902_v4, %v898_v3 }
 0x86e   :  { %2217 = vtanh.f32 %v904_v5 }
 0x86f   :  { %v735_v10 = vpop.permute.xlu1 %734 }
 0x870   :  { %738 = vst.msk [vmem:[#allocation3 + $0x8] sm:$0xff] %vm648_vm11, %v735_v10  ;;  %742 = vst.msk [vmem:[#allocation4 + $0x10] sm:$0xff] %vm648_vm11, %v735_v10 }
 0x871   :  { %740 = vst.msk [vmem:[#allocation3 + $0x10] sm:$0xff] %vm651_vm12, %v735_v10  ;;  %744 = vst.msk [vmem:[#allocation4 + $0x8] sm:$0xff] %vm651_vm12, %v735_v10 }
 0x872   :  { %826 = vst.msk [vmem:[#allocation3 + $0x10] sm:$0xff] %vm648_vm11, %v824_v23  ;;  %828 = vst.msk [vmem:[#allocation4 + $0x8] sm:$0xff] %vm648_vm11, %v824_v23 }
 0x873   :  { %827 = vst.msk [vmem:[#allocation3 + $0x8] sm:$0xff] %vm651_vm12, %v824_v23  ;;  %829 = vst.msk [vmem:[#allocation4 + $0x10] sm:$0xff] %vm651_vm12, %v824_v23 }
 0x878   :  { %v2218_v18 = vpop.eup %2217 }
 0x879   :  { %v906_v22 = vmul.f32 %v2218_v18, %v2216_v16  ;;  %v922_v39 = vld [vmem:[#allocation4 + $0x8] sm:$0xff]  ;;  %v917_v47 = vld [vmem:[#allocation3 + $0x10] sm:$0xff]  ;;  %v1270_v16 = vadd.f32 %v1269_v50, %v2985_v15 }
 0x87a   :  { %v923_v30 = vld [vmem:[#allocation4 + $0x10] sm:$0xff]  ;;  %v916_v44 = vld [vmem:[#allocation3 + $0x8] sm:$0xff] }
 0x87b   :  { %908 = vrot.lane.b32.xlu1 %v906_v22, %s2466_s3 }
 0x8ed   :  { %v909_v36 = vpop.permute.xlu1 %908 }
 0x8ee   :  { %911 = vst.msk [vmem:[#allocation3 + $0x18] sm:$0xff] %vm648_vm11, %v909_v36  ;;  %913 = vst.msk [vmem:[#allocation4] sm:$0xff] %vm648_vm11, %v909_v36 }
 0x8ef   :  { %912 = vst.msk [vmem:[#allocation3] sm:$0xff] %vm651_vm12, %v909_v36  ;;  %914 = vst.msk [vmem:[#allocation4 + $0x18] sm:$0xff] %vm651_vm12, %v909_v36 }
 0x8f5   :  { %v921_v38 = vld [vmem:[#allocation4] sm:$0xff]  ;;  %v918_v46 = vld [vmem:[#allocation3 + $0x18] sm:$0xff] }
 0x8f6   :  { %v925_v26 = vpack.c.bf16 %v922_v39, %v921_v38  ;;  %v924_v29 = vld [vmem:[#allocation4 + $0x18] sm:$0xff]  ;;  %v915_v43 = vld [vmem:[#allocation3] sm:$0xff]  ;;  %v920_v48 = vpack.c.bf16 %v918_v46, %v917_v47 }
 0x8f7   :  { %v926_v41 = vpack.c.bf16 %v924_v29, %v923_v30  ;;  %v919_v45 = vpack.c.bf16 %v916_v44, %v915_v43 }
 0x8f8   :  { %1946 = vmatmul.mubr.msk.bf16.vlgmr.msra.gmra.mrb[12].mxu0 %vm575_vm10, %v925_v26 }
 0x8f9   :  { %1089 = vmatpush1.bf16.msra.mxu0 %v2131_v25  ;;  %1031 = vmatprep.mubr.bf16.mxu0 %v2464_v1 }
 0x8fa   :  { %1090 = vmatprep.subr.bf16.mxu0 %v2136_v27 }
 0x8fd   :  { %1091 = vmatpush1.bf16.msra.mxu0 %v2134_v28 }
 0x8fe   :  { %1092 = vmatprep.subr.bf16.mxu0 %v2142_v40 }
 0x900   :  { %1947 = vmatmul.mubr.msk.bf16.gmra.mrb[16].mxu0 %vm575_vm10, %v926_v41 }
 0x901   :  { %1093 = vmatpush1.bf16.msra.mxu0 %v2140_v19  ;;  %1120 = vmatprep.mubr.bf16.mxu0 %v2464_v1 }
 0x902   :  { %1094 = vmatprep.subr.bf16.mxu0 %v2148_v42 }
 0x905   :  { %1095 = vmatpush1.bf16.msra.mxu0 %v2146_v21 }
 0x906   :  { %1376 = vmatprep.subr.bf16.mxu0 %v2913_v13 }
 0x908   :  { %1956 = vmatmul.mubr.msk.bf16.vlgmr.msra.gmra.mrb[12].mxu0 %vm575_vm10, %v919_v45 }
 0x909   :  { %1130 = vmatprep.mubr.bf16.mxu0 %v2464_v1  ;;  %1377 = vmatpush1.bf16.msra.mxu0 %v2915_v14 }
 0x90a   :  { %1378 = vmatprep.subr.bf16.mxu0 %v2919_v17 }
 0x90d   :  { %1379 = vmatpush1.bf16.msra.mxu0 %v2921_v20 }
 0x90e   :  { %1380 = vmatprep.subr.bf16.mxu0 %v2926_v32 }
 0x910   :  { %1957 = vmatmul.mubr.msk.bf16.gmra.mrb[16].mxu0 %vm575_vm10, %v920_v48 }
 0x911   :  { %1381 = vmatpush1.bf16.msra.mxu0 %v2928_v34  ;;  %1408 = vmatprep.mubr.bf16.mxu0 %v2464_v1 }
 0x912   :  { %1382 = vmatprep.subr.bf16.mxu0 %v2932_v35 }
 0x915   :  { %1383 = vmatpush1.bf16.msra.mxu0 %v2934_v24 }
 0x916   :  { %2004 = vmatprep.subr.bf16.mxu0 %v2465_v37 }
 0x9db   :  { %v1122_v59 = vpop.f32.mrb[12].mxu0 }
 0x9dc   :  { %v1153_v60 = vadd.f32 %v1146_v56, %v1122_v59  ;;  %v1124_v61 = vpop.f32.mrb[13].mxu0 }
 0x9dd   :  { %v1154_v62 = vadd.f32 %v1150_v57, %v1124_v61  ;;  %v1126_v63 = vpop.f32.mrb[14].mxu0 }
 0x9de   :  { %v1155_v31 = vadd.f32 %v1146_v56, %v1126_v63  ;;  %v1128_v33 = vpop.f32.mrb[15].mxu0  ;;  %v1274_v0 = vadd.f32 %v1268_v58, %v1153_v60 }
 0x9df   :  { %1162 = vst.msk [vmem:[#allocation5 + $0x8] sm:$0xff] %vm575_vm10, %v1154_v62  ;;  %v1156_v2 = vadd.f32 %v1150_v57, %v1128_v33 }
 0x9e0   :  { %v1966_v3 = vmul.f32 -1.442695, %v1274_v0 }
 0x9e1   :  { %1164 = vst.msk [vmem:[#allocation5 + $0x18] sm:$0xff] %vm575_vm10, %v1156_v2 }
 0x9e2   :  { %2219 = vpow2.f32 %v1966_v3 }
 0x9e3   :  { %v1132_v7 = vpop.f32.mrb[16].mxu0 }
 0x9e4   :  { %v2978_v4 = vadd.f32 %v1146_v56, %v1132_v7  ;;  %v1134_v5 = vpop.f32.mrb[17].mxu0 }
 0x9e5   :  { %v1158_v6 = vadd.f32 %v1150_v57, %v1134_v5  ;;  %v1136_v8 = vpop.f32.mrb[18].mxu0 }
 0x9e6   :  { %v2980_v10 = vadd.f32 %v1146_v56, %v1136_v8  ;;  %v1138_v11 = vpop.f32.mrb[19].mxu0  ;;  %v1192_v36 = vld [vmem:[#allocation5 + $0x8] sm:$0xff] }
 0x9e7   :  { %1166 = vst.msk [vmem:[#allocation5 + $0x28] sm:$0xff] %vm575_vm10, %v1158_v6  ;;  %v1160_v23 = vadd.f32 %v1150_v57, %v1138_v11 }
 0x9e8   :  { %v1299_v43 = vld [vmem:[#allocation5 + $0x18] sm:$0xff] }
 0x9e9   :  { %1168 = vst.msk [vmem:[#allocation5 + $0x38] sm:$0xff] %vm575_vm10, %v1160_v23 }
 0x9ec   :  { %v2220_v12 = vpop.eup %2219 }
 0x9ed   :  { %v1278_v13 = vadd.f32 1.0, %v2220_v12 }
 0x9ef   :  { %2221 = vrcp.f32 %v1278_v13 }
 0x9f9   :  { %v2222_v18 = vpop.eup %2221 }
 0x9fa   :  { %v1281_v22 = vmul.f32 %v2222_v18, %v1270_v16 }
 0x9fc   :  { %v1282_v38 = vadd.f32 %v1281_v22, %v1192_v36 }
 0x9fe   :  { %2223 = vtanh.f32 %v1282_v38 }
 0xa08   :  { %v2224_v39 = vpop.eup %2223 }
 0xa09   :  { %v1284_v25 = vsub.f32 0.0, %v2224_v39 }
 0xa0b   :  { %1286 = vrot.lane.b32.xlu0 %v1284_v25, %s2466_s3 }
 0xa7d   :  { %v1287_v26 = vpop.permute.xlu0 %1286 }
 0xa7e   :  { %v1289_v27 = vmul.f32 %v2222_v18, %v1287_v26  ;;  %v1443_v26 = vld [vmem:[#allocation5 + $0x38] sm:$0xff] }
 0xa80   :  { %1291 = vrot.lane.b32.xlu1 %v1289_v27, %s2466_s3 }
 0xaf2   :  { %v1292_v28 = vpop.permute.xlu1 %1291 }
 0xaf3   :  { %v2990_v40 = vadd.f32 %v2224_v39, %v1292_v28 }
 0xaf5   :  { %v1300_v9 = vpack.c.bf16 %v2990_v40, %v2990_v40 }
 0xaf7   :  { %1967 = vmatmul.mubr.msk.bf16.vlgmr.msra.gmra.mrb[16].mxu1 %vm575_vm10, %v1300_v9 }
 0xaf8   :  { %1449 = vmatpush1.bf16.msra.mxu1 %v2915_v14  ;;  %1480 = vmatprep.mubr.bf16.mxu1 %v2464_v1 }
 0xaf9   :  { %1450 = vmatprep.subr.bf16.mxu1 %v2919_v17 }
 0xafc   :  { %1451 = vmatpush1.bf16.msra.mxu1 %v2921_v20 }
 0xafd   :  { %1452 = vmatprep.subr.bf16.mxu1 %v2926_v32 }
 0xb00   :  { %1453 = vmatpush1.bf16.msra.mxu1 %v2928_v34 }
 0xb01   :  { %1454 = vmatprep.subr.bf16.mxu1 %v2932_v35 }
 0xb04   :  { %1455 = vmatpush1.bf16.msra.mxu1 %v2934_v24 }
 0xb05   :  { %1734 = vmatprep.subr.bf16.mxu1 %v2464_v1 }
 0xbca   :  { %v1338_v29 = vpop.f32.mrb[16].mxu1 }
 0xbcb   :  { %v1339_v30 = vadd.f32 %v1338_v29, %v2971_v55  ;;  %v1340_v14 = vpop.f32.mrb[17].mxu1 }
 0xbcc   :  { %v1342_v19 = vpop.f32.mrb[18].mxu1  ;;  %v1341_v32 = vadd.f32 %v1340_v14, %v2985_v15 }
 0xbcd   :  { %v1345_v41 = vadd.f32 %v1339_v30, %v1155_v31  ;;  %v1343_v42 = vpop.f32.mrb[19].mxu1  ;;  %v1371_v31 = vld [vmem:[#allocation5 + $0x28] sm:$0xff] }
 0xbcf   :  { %v1968_v17 = vmul.f32 -1.442695, %v1345_v41 }
 0xbd1   :  { %2225 = vpow2.f32 %v1968_v17 }
 0xbdb   :  { %v2226_v20 = vpop.eup %2225 }
 0xbdc   :  { %v1349_v21 = vadd.f32 1.0, %v2226_v20 }
 0xbde   :  { %2227 = vrcp.f32 %v1349_v21 }
 0xbe8   :  { %v2228_v34 = vpop.eup %2227 }
 0xbe9   :  { %v1352_v35 = vmul.f32 %v2228_v34, %v1341_v32 }
 0xbeb   :  { %v1353_v24 = vadd.f32 %v1352_v35, %v1299_v43 }
 0xbed   :  { %2229 = vtanh.f32 %v1353_v24  ;;  %v1522_v24 = vld [vmem:[#allocation19] sm:$0xf] }
 0xbf7   :  { %v2230_v44 = vpop.eup %2229 }
 0xbf8   :  { %v1355_v45 = vsub.f32 %v2990_v40, %v2230_v44 }
 0xbfa   :  { %1357 = vrot.lane.b32.xlu0 %v1355_v45, %s2466_s3  ;;  %v2155_v45 = vld [vmem:[%s3131_s12] sm:$0xff]  }
 0xc6c   :  { %v1358_v46 = vpop.permute.xlu0 %1357 }
 0xc6d   :  { %v1360_v47 = vmul.f32 %v2228_v34, %v1358_v46  ;;  %v2156_v46 = vld [vmem:[%s3131_s12 + $0x8] sm:$0xff]  }
 0xc6f   :  { %1362 = vrot.lane.b32.xlu1 %v1360_v47, %s2466_s3  ;;  %v2157_v47 = vld [vmem:[%s3131_s12 + $0x10] sm:$0xff]  }
 0xce1   :  { %v1363_v48 = vpop.permute.xlu1 %1362 }
 0xce2   :  { %v1365_v49 = vadd.f32 %v2230_v44, %v1363_v48  ;;  %v1568_v44 = vld [vmem:[#allocation20] sm:$0xf]  ;;  %v2158_v48 = vld [vmem:[%s3131_s12 + $0x18] sm:$0xff]  }
 0xce4   :  { %v1372_v50 = vpack.c.bf16 %v1365_v49, %v1365_v49  ;;  %v1366_v30 = vadd.f32 %v1365_v49, %v2990_v40 }
 0xce6   :  { %1969 = vmatmul.mubr.msk.bf16.vlgmr.msra.gmra.mrb[20].mxu0 %vm575_vm10, %v1372_v50  ;;  %v2160_v50 = vld [vmem:[%s3131_s12 + $0x28] sm:$0xff]  }
 0xce7   :  { %2006 = vmatprep.mubr.msk.bf16.mxu0 %vm2467_vm13, %v2465_v37 }
 0xdb9   :  { %v1410_v51 = vpop.f32.mrb[20].mxu0 }
 0xdba   :  { %v1411_v52 = vadd.f32 %v1410_v51, %v2971_v55  ;;  %v1412_v53 = vpop.f32.mrb[21].mxu0  ;;  %v2161_v51 = vld [vmem:[%s3131_s12 + $0x30] sm:$0xff]  }
 0xdbb   :  { %v1414_v54 = vpop.f32.mrb[22].mxu0  ;;  %v1413_v61 = vadd.f32 %v1412_v53, %v2985_v15  ;;  %v2163_v53 = vld [vmem:[%s3131_s12 + $0x40] sm:$0xff]  }
 0xdbc   :  { %v1417_v56 = vadd.f32 %v1411_v52, %v2978_v4  ;;  %v1415_v57 = vpop.f32.mrb[23].mxu0  ;;  %v2162_v52 = vld [vmem:[%s3131_s12 + $0x38] sm:$0xff]   ;;  %v2164_v54 = vld [vmem:[%s3131_s12 + $0x48] sm:$0xff]  }
 0xdbe   :  { %v1970_v58 = vmul.f32 -1.442695, %v1417_v56  ;;  %v2165_v56 = vld [vmem:[%s3131_s12 + $0x50] sm:$0xff]  }
 0xdc0   :  { %2231 = vpow2.f32 %v1970_v58 }
 0xdca   :  { %v2232_v59 = vpop.eup %2231 }
 0xdcb   :  { %v1421_v60 = vadd.f32 1.0, %v2232_v59 }
 0xdcd   :  { %2233 = vrcp.f32 %v1421_v60  ;;  %v2166_v60 = vld [vmem:[%s3131_s12 + $0x58] sm:$0xff]  }
 0xdd7   :  { %v2234_v62 = vpop.eup %2233 }
 0xdd8   :  { %v1424_v63 = vmul.f32 %v2234_v62, %v1413_v61 }
 0xdda   :  { %v1425_v33 = vadd.f32 %v1424_v63, %v1371_v31 }
 0xddc   :  { %2235 = vtanh.f32 %v1425_v33  ;;  %v2168_v33 = vld [vmem:[%s3133_s14 + $0x8] sm:$0xff]  }
 0xde6   :  { %v2236_v0 = vpop.eup %2235 }
 0xde7   :  { %v1427_v2 = vsub.f32 %v1365_v49, %v2236_v0 }
 0xde9   :  { %1429 = vrot.lane.b32.xlu0 %v1427_v2, %s2466_s3 }
 0xe5b   :  { %v1430_v3 = vpop.permute.xlu0 %1429 }
 0xe5c   :  { %v1432_v7 = vmul.f32 %v2234_v62, %v1430_v3  ;;  %v2167_v62 = vld [vmem:[%s3133_s14] sm:$0xff]  }
 0xe5e   :  { %1434 = vrot.lane.b32.xlu1 %v1432_v7, %s2466_s3 }
 0xed0   :  { %v1435_v4 = vpop.permute.xlu1 %1434 }
 0xed1   :  { %v1437_v5 = vadd.f32 %v2236_v0, %v1435_v4 }
 0xed3   :  { %v1444_v6 = vpack.c.bf16 %v1437_v5, %v1437_v5  ;;  %v1438_v41 = vadd.f32 %v1437_v5, %v1366_v30 }
 0xed5   :  { %1971 = vmatmul.mubr.msk.bf16.vlgmr.msra.gmra.mrb[20].mxu1 %vm575_vm10, %v1444_v6  ;;  %v2170_v6 = vld [vmem:[%s3133_s14 + $0x18] sm:$0xff]  }
 0xed6   :  { %1735 = vmatpush1.bf16.msra.mxu1 %v2155_v45 }
 0xed7   :  { %1736 = vmatprep.subr.bf16.mxu1 %v2464_v1 }
 0xeda   :  { %1737 = vmatpush1.bf16.msra.mxu1 %v2156_v46 }
 0xedb   :  { %1738 = vmatprep.subr.bf16.mxu1 %v2464_v1 }
 0xede   :  { %1739 = vmatpush1.bf16.msra.mxu1 %v2157_v47 }
 0xedf   :  { %1740 = vmatprep.subr.bf16.mxu1 %v2464_v1 }
 0xee2   :  { %1741 = vmatpush1.bf16.msra.mxu1 %v2158_v48 }
 0xee3   :  { %1742 = vmatprep.subr.bf16.mxu1 %v2464_v1 }
 0xfa8   :  { %v1482_v8 = vpop.f32.mrb[20].mxu1 }
 0xfa9   :  { %v1483_v11 = vadd.f32 %v1482_v8, %v2971_v55  ;;  %v1484_v23 = vpop.f32.mrb[21].mxu1  ;;  %v1975_v8 = vld [vmem:[%s3132_s13] ss:$0 sm:$0xff] }
 0xfaa   :  { %v1486_v12 = vpop.f32.mrb[22].mxu1  ;;  %v1485_v38 = vadd.f32 %v1484_v23, %v2985_v15 }
 0xfab   :  { %v1489_v13 = vadd.f32 %v1483_v11, %v2980_v10  ;;  %v1487_v16 = vpop.f32.mrb[23].mxu1  ;;  %v1367_v10 = vmax.f32 %v2990_v40, %v1365_v49  ;;  %v2159_v49 = vld [vmem:[%s3131_s12 + $0x20] sm:$0xff]  }
 0xfac   :  { %1743 = vmatpush1.bf16.msra.mxu1 %v2159_v49 }
 0xfad   :  { %v1972_v18 = vmul.f32 -1.442695, %v1489_v13  ;;  %v1439_v19 = vmax.f32 %v1367_v10, %v1437_v5  ;;  %1744 = vmatprep.subr.bf16.mxu1 %v2464_v1 }
 0xfaf   :  { %2237 = vpow2.f32 %v1972_v18 }
 0xfb0   :  { %1745 = vmatpush1.bf16.msra.mxu1 %v2160_v50 }
 0xfb1   :  { %1746 = vmatprep.subr.bf16.mxu1 %v2464_v1 }
 0xfb4   :  { %1747 = vmatpush1.bf16.msra.mxu1 %v2161_v51 }
 0xfb5   :  { %1748 = vmatprep.subr.bf16.mxu1 %v2464_v1 }
 0xfb8   :  { %1749 = vmatpush1.bf16.msra.mxu1 %v2162_v52 }
 0xfb9   :  { %v2238_v22 = vpop.eup %2237  ;;  %1750 = vmatprep.subr.bf16.mxu1 %v2464_v1 }
 0xfba   :  { %v1493_v36 = vadd.f32 1.0, %v2238_v22 }
 0xfbc   :  { %2239 = vrcp.f32 %v1493_v36  ;;  %1751 = vmatpush1.bf16.msra.mxu1 %v2163_v53 }
 0xfbd   :  { %1752 = vmatprep.subr.bf16.mxu1 %v2464_v1 }
 0xfc0   :  { %1753 = vmatpush1.bf16.msra.mxu1 %v2164_v54 }
 0xfc1   :  { %1754 = vmatprep.subr.bf16.mxu1 %v2464_v1 }
 0xfc4   :  { %1755 = vmatpush1.bf16.msra.mxu1 %v2165_v56 }
 0xfc5   :  { %1756 = vmatprep.subr.bf16.mxu1 %v2464_v1 }
 0xfc6   :  { %v2240_v39 = vpop.eup %2239 }
 0xfc7   :  { %v1496_v25 = vmul.f32 %v2240_v39, %v1485_v38 }
 0xfc8   :  { %1757 = vmatpush1.bf16.msra.mxu1 %v2166_v60 }
 0xfc9   :  { %v1497_v27 = vadd.f32 %v1496_v25, %v1443_v26 }
 0xfcb   :  { %2241 = vtanh.f32 %v1497_v27 }
 0xfd5   :  { %v2242_v28 = vpop.eup %2241 }
 0xfd6   :  { %v1499_v9 = vsub.f32 %v1437_v5, %v2242_v28  ;;  %v2169_v5 = vld [vmem:[%s3133_s14 + $0x10] sm:$0xff]   ;;  %s1866_s14 = sshll.u32 %s2470_s27, 4  ;;  %s1867_s14 = int_to_ptr.vmem [resolvable:$true] %s1866_s14 }
 0xfd7   :  { %s2419_s13 = scalar_lea.vmem %s1867_s14, 128  ;;  %p2424_p9 = scmp.lt.s32.totalorder %s1867_s14, %s1867_s14 }
 0xfd8   :  { %1501 = vrot.lane.b32.xlu0 %v1499_v9, %s2466_s3  ;;  %p2420_p8 = scmp.ne.s32.totalorder %s1867_s14, %s2419_s13  ;;  %p2425_p10 = scmp.lt.s32.totalorder %s2419_s13, %s2419_s13 }
 0xfda   :  { %p2426_p11 = por %p2425_p10, %p2424_p9 }
 0xfdc   :  { %p2427_p12 = pnand %p2426_p11, %p2420_p8 }
0x104a   :  { %v1502_v55 = vpop.permute.xlu0 %1501 }
0x104b   :  { %v1504_v29 = vmul.f32 %v2240_v39, %v1502_v55 }
0x104d   :  { %1506 = vrot.lane.b32.xlu1 %v1504_v29, %s2466_s3 }
0x10bf   :  { %v1507_v14 = vpop.permute.xlu1 %1506 }
0x10c0   :  { %v1509_v15 = vadd.f32 %v2242_v28, %v1507_v14 }
0x10c2   :  { %v1511_v42 = vmax.f32 %v1439_v19, %v1509_v15  ;;  %1513 = vst.msk [vmem:[#allocation6] sm:$0xff] %vm648_vm11, %v1509_v15  ;;  %1515 = vrot.lane.b32.xlu0 %v1509_v15, %s2468_s7  ;;  %v1510_v17 = vadd.f32 %v1509_v15, %v1438_v41 }
0x10c4   :  { %1623 = vst.msk [vmem:[#allocation7 + $0x8] sm:$0xff] %vm575_vm10, %v1511_v42  ;;  %v1512_v20 = vmul.f32 0.25, %v1510_v17 }
0x10c6   :  { %1618 = vrot.lane.b32.xlu0 %v1512_v20, %s2466_s3 }
0x10c9   :  { %v1519_v34 = vld [vmem:[#allocation6] sm:$0xff] }
0x10cb   :  { %v1625_v40 = vld [vmem:[#allocation7 + $0x8] sm:$0xff] }
0x10cc   :  { %v1627_v21 = vpack.c.bf16 %v1625_v40, %v1625_v40 }
0x10ce   :  { %1988 = vmatprep.mubr.msk.bf16.mxu1 %vm575_vm10, %v1627_v21 }
0x1134   :  { %v1516_v32 = vpop.permute.xlu0 %1515 }
0x1135   :  { %1518 = vst.msk [vmem:[#allocation6 + $0x8] sm:$0xff] %vm648_vm11, %v1516_v32 }
0x1138   :  { %v1619_v3 = vpop.permute.xlu0 %1618 }
0x113c   :  { %v1520_v35 = vld [vmem:[#allocation6 + $0x8] sm:$0xff] }
0x113d   :  { %v1521_v43 = vpack.c.bf16 %v1520_v35, %v1519_v34 }
0x113f   :  { %2005 = vmatpush3.bf16.msra.mxu0 %v1521_v43 }
0x1140   :  { %2010 = vmatprep.subr.bf16.mxu0 %v2465_v37 }
0x1142   :  { %2007 = vmatmul.mubr.msk.bf16.vlgmr.msra.gmra.mrb[24].mxu0 %vm1523_vm14, %v1522_v24 }
0x1143   :  { %2011 = vmatpush3.bf16.msra.mxu0 %v1521_v43  ;;  %2012 = vmatprep.mubr.msk.bf16.mxu0 %vm2467_vm13, %v2465_v37 }
0x1144   :  { %2016 = vmatprep.subr.bf16.mxu0 %v2465_v37 }
0x114a   :  { %2013 = vmatmul.mubr.msk.bf16.vlgmr.msra.gmra.mrb[28].mxu0 %vm1523_vm14, %v1568_v44 }
0x114b   :  { %2024 = vmatprep.mubr.msk.bf16.mxu0 %vm2467_vm13, %v2465_v37  ;;  %2017 = vmatpush3.bf16.msra.mxu0 %v2167_v62 }
0x114c   :  { %2018 = vmatprep.subr.bf16.mxu0 %v2465_v37 }
0x114f   :  { %2019 = vmatpush3.bf16.msra.mxu0 %v2168_v33 }
0x1150   :  { %2020 = vmatprep.subr.bf16.mxu0 %v2465_v37 }
0x1153   :  { %2021 = vmatpush3.bf16.msra.mxu0 %v2169_v5 }
0x1154   :  { %2022 = vmatprep.subr.bf16.mxu0 %v2465_v37  ;;  %v1989_v37 = vld [vmem:[%s3134_s15] ss:$0 sm:$0xff] }
0x1157   :  { %2023 = vmatpush3.bf16.msra.mxu0 %v2170_v6 }
0x1215   :  { %v1561_v57 = vpop.f32.mrb[24].mxu0 }
0x1216   :  { %1567 = vst.msk [vmem:[#allocation7] sm:$0xff] %vm648_vm11, %v1561_v57  ;;  %v2008_v58 = vpop.f32.mrb[25].mxu0 }
0x1217   :  { %v1564_v59 = vpop.f32.mrb[26].mxu0 }
0x1218   :  { %v2009_v61 = vpop.f32.mrb[27].mxu0 }
0x121d   :  { %v1606_v63 = vpop.f32.mrb[28].mxu0 }
0x121e   :  { %1613 = vrot.lane.b32.xlu1 %v1606_v63, %s2469_s5  ;;  %v2014_v31 = vpop.f32.mrb[29].mxu0 }
0x121f   :  { %v1609_v0 = vpop.f32.mrb[30].mxu0 }
0x1220   :  { %v2015_v2 = vpop.f32.mrb[31].mxu0 }
0x1290   :  { %v1614_v1 = vpop.permute.xlu1 %1613 }
0x1291   :  { %1616 = vst.msk [vmem:[#allocation7] sm:$0xff] %vm651_vm12, %v1614_v1 }
0x1292   :  { %1622 = vst.msk [vmem:[#allocation7] sm:$0xff] %vm1621_vm15, %v1619_v3 }
0x1299   :  { %v1624_v7 = vld [vmem:[#allocation7] sm:$0xff] }
0x129a   :  { %v1626_v4 = vpack.c.bf16 %v1624_v7, %v1624_v7 }
0x129c   :  { %1767 = vmatmul.mubr.bf16.vlgmr.msra.gmra.mrb[24].mxu1 %v1626_v4 }
0x136f   :  { %v1768_v11 = vpop.f32.mrb[24].mxu1 }
0x1370   :  { %v1769_v23 = vadd.f32 %v1975_v8, %v1768_v11  ;;  %v1770_v12 = vpop.f32.mrb[25].mxu1 }
0x1371   :  { %v1771_v13 = vpop.f32.mrb[26].mxu1 }
0x1372   :  { %v1774_v16 = vmax.f32 %v1769_v23, 0.0  ;;  %v1772_v18 = vpop.f32.mrb[27].mxu1 }
0x1374   :  { %v1775_v22 = vpack.c.bf16 %v1774_v16, %v1774_v16 }
0x1376   :  { %2025 = vmatmul.mubr.msk.bf16.vlgmr.msra.gmra.mrb[32].mxu0 %vm575_vm10, %v1775_v22 }
0x1449   :  { %v1852_v36 = vpop.f32.mrb[32].mxu0 }
0x144a   :  { %v1853_v38 = vadd.f32 %v1989_v37, %v1852_v36  ;;  %v2026_v39 = vpop.f32.mrb[33].mxu0 }
0x144b   :  { %v1855_v25 = vpop.f32.mrb[34].mxu0 }
0x144c   :  { %v2027_v26 = vpop.f32.mrb[35].mxu0  ;;  %1859 = vst.msk [vmem:[#allocation22] sm:$0xff] %vm1858_vm0, %v1853_v38 }
0x144d   :  { %2430 = shalt.err (!%p2427_p12)
}
0x144e   :  { %s2431_s15 = scalar_lea.hbm %s3135_s16, 128 }
0x144f   :  { %p2432_p13 = scmp.ne.s32.totalorder %s3135_s16, %s2431_s15  ;;  %p2435_p0 = scmp.lt.u32.totalorder %s2431_s15, %s3135_s16 }
0x1451   :  { %p2437_p1 = pnand %p2435_p0, %p2432_p13 }
0x1453   :  { %2440 = shalt.err (!%p2437_p1)
}
0x1454   :  { %1869 = dma.vmem_to_hbm [thread:$0]  %s1867_s14, 128, %s3135_s16, [#allocation10]  }
0x1455   :  { %2451 = dma.done.wait [#allocation10], 128  }
0x1456   :  { %2452 = vsyncadd [#allocation10], 4294967168 }
0x1457   :  { %1873 = vsyncpa [#allocation9], 1 }
0x1458   :  { %1874 = vsyncpa [#allocation12], 1 }
0x1459   :  { %1875 = vsyncpa [#allocation15], 1 }
0x145a   :  { %1876 = vsyncpa [#allocation18], 1 }
0x145b   :  { %1877 = vsyncpa [#allocation21], 1 }
0x145c   :  { %1878 = vsyncpa [#allocation10], 1 }

</bundles_post_ra>
